<compile_context>
chip_gen: v7x
topology: tpu7x:2x2x1
jax: 0.10.0
libtpu: 0.0.40
codegen_flags: <defaults>
</compile_context>

<pallas_src>
import functools

import jax
import jax.numpy as jnp
from jax.experimental import pallas as pl
from jax.experimental.pallas import tpu as pltpu

D1 = 2048
D2 = 1633
NUM_FEAT = D1 + D2          # 3681, hard-wired by nn.Linear(3681, 10)
HID = 64
GATES = 2
NUM_CLASSES = 10


def _nima_kernel(x1_ref, x2_ref,
                 fc_wt_ref, fc_b_ref,
                 fc1_w_ref, fc1_b_ref,
                 hw1t_ref, hw2t_ref, hb_ref,
                 out_ref):
    # bf16 feature tiles -> f32 for exact stats / matmul accumulation
    x1 = x1_ref[...].astype(jnp.float32)    # (TB, D1)
    x2 = x2_ref[...].astype(jnp.float32)    # (TB, D2)

    def stats(v, n):
        # one pass over v: max/min/sum/sumsq; torch.std default is unbiased (ddof=1)
        vmax = jnp.max(v, axis=1, keepdims=True)
        vmin = jnp.min(v, axis=1, keepdims=True)
        s = jnp.sum(v, axis=1, keepdims=True)
        sq = jnp.sum(v * v, axis=1, keepdims=True)
        mean = s * (1.0 / n)
        var = jnp.maximum(sq - n * mean * mean, 0.0) * (1.0 / (n - 1))
        return vmax, vmin, mean, jnp.sqrt(var)

    # 8 per-sample stat columns, same order as torch.cat([x1_in, x2_in], 1)
    st = stats(x1, D1) + stats(x2, D2)      # tuple of 8 x (TB, 1)

    # gate MLP on the VPU: h = tanh(x_in @ fc_w.T + b) as 8 broadcast-FMAs
    # (avoids the lane-axis concat and a heavily padded (B,8)@(8,64) MXU op)
    fc_wt = fc_wt_ref[...]                  # (8, HID), rows match stat order
    acc = st[0] * fc_wt[0:1, :]
    for k in range(1, 8):
        acc = acc + st[k] * fc_wt[k:k + 1, :]
    h = jnp.tanh(acc + fc_b_ref[...])       # (TB, HID)

    # gate = sigmoid(fc1(h)); computed as two lane-reductions (output is only 2 wide)
    fc1_w = fc1_w_ref[...]                  # (2, HID) — torch layout
    g1 = jax.nn.sigmoid(
        jnp.sum(h * fc1_w[0:1, :], axis=1, keepdims=True) + fc1_b_ref[:, 0:1])
    g2 = jax.nn.sigmoid(
        jnp.sum(h * fc1_w[1:2, :], axis=1, keepdims=True) + fc1_b_ref[:, 1:2])

    # head: ReLU -> Dropout(eval: identity) -> Linear(3681,10) -> Softmax(dim=1)
    # Gate folded into the 10-wide logits: relu(x * g) == g * relu(x) since
    # sigmoid output is strictly positive, and the Linear over the concatenated
    # features splits exactly into two matmuls at the D1/D2 seam.
    r1 = jnp.maximum(x1, 0.0)
    r2 = jnp.maximum(x2, 0.0)
    p1 = jnp.dot(r1, hw1t_ref[...], preferred_element_type=jnp.float32)  # (TB, 10)
    p2 = jnp.dot(r2, hw2t_ref[...], preferred_element_type=jnp.float32)  # (TB, 10)
    logits = g1 * p1 + g2 * p2 + hb_ref[...]

    m = jnp.max(logits, axis=1, keepdims=True)
    e = jnp.exp(logits - m)
    denom = jnp.sum(e, axis=1, keepdims=True)
    out_ref[...] = (e * pl.reciprocal(denom, approx=False)).astype(out_ref.dtype)


def _round_up(x, m):
    return ((x + m - 1) // m) * m


def prepare_params(params):
    """One-time weight prep (transpose / split) hoisted out of the hot path."""
    return {
        "fc_wt": params["fc_w"].T,                      # (8, 64)
        "fc_b": params["fc_b"].reshape(1, HID),
        "fc1_w": params["fc1_w"],                       # (2, 64) torch layout
        "fc1_b": params["fc1_b"].reshape(1, GATES),
        "hw1t": params["head_w"][:, :D1].T,             # (D1, 10)
        "hw2t": params["head_w"][:, D1:].T,             # (D2, 10)
        "hb": params["head_b"].reshape(1, NUM_CLASSES),
    }


def nima_pallas(x1, x2, prep, *, tb=256):
    """NIMA forward (post-backbone) as a batch-tiled Pallas kernel."""
    B = x1.shape[0]
    # tile size: multiple of 8 sublanes, capped for v7x's smaller VMEM
    TB = min(tb, _round_up(B, 8))
    Bp = _round_up(B, TB)
    if Bp != B:
        pad = ((0, Bp - B), (0, 0))
        x1 = jnp.pad(x1, pad)
        x2 = jnp.pad(x2, pad)
    # bf16 transport for the dominant HBM reads (upcast to f32 inside the kernel)
    x1 = x1.astype(jnp.bfloat16)
    x2 = x2.astype(jnp.bfloat16)
    nb = Bp // TB

    def feat_spec(d):
        return pl.BlockSpec((TB, d), lambda b: (b, 0))

    def resident(shape):
        return pl.BlockSpec(shape, lambda b: (0,) * len(shape))

    weight_bytes = 4 * (NUM_FEAT * NUM_CLASSES + 8 * HID + HID
                        + GATES * HID + GATES + NUM_CLASSES)
    cost = pl.CostEstimate(
        flops=2 * Bp * NUM_FEAT * NUM_CLASSES + 8 * Bp * NUM_FEAT,
        transcendentals=Bp * (HID + GATES + NUM_CLASSES + 1),
        bytes_accessed=Bp * NUM_FEAT * 2 + Bp * NUM_CLASSES * 4 + weight_bytes,
    )

    out = pl.pallas_call(
        _nima_kernel,
        out_shape=jax.ShapeDtypeStruct((Bp, NUM_CLASSES), jnp.float32),
        grid=(nb,),
        in_specs=[
            feat_spec(D1),                       # x1 tile
            feat_spec(D2),                       # x2 tile
            resident((8, HID)),                  # fc_wt
            resident((1, HID)),                  # fc_b
            resident((GATES, HID)),              # fc1_w
            resident((1, GATES)),                # fc1_b
            resident((D1, NUM_CLASSES)),         # head W (x1 half, transposed)
            resident((D2, NUM_CLASSES)),         # head W (x2 half, transposed)
            resident((1, NUM_CLASSES)),          # head bias
        ],
        out_specs=pl.BlockSpec((TB, NUM_CLASSES), lambda b: (b, 0)),
        compiler_params=pltpu.CompilerParams(
            dimension_semantics=("parallel",),
            vmem_limit_bytes=48 * 1024 * 1024),
        cost_estimate=cost,
    )(x1, x2, prep["fc_wt"], prep["fc_b"], prep["fc1_w"], prep["fc1_b"],
      prep["hw1t"], prep["hw2t"], prep["hb"])
    return out[:B]


# ---------------------------------------------------------------------------
# plain-JAX glue: deterministic parameter init + stand-in backbone + reference
# ---------------------------------------------------------------------------
def init_params(key):
    ks = jax.random.split(key, 8)
    scale = 0.02
    return {
        "fc_w":   scale * jax.random.normal(ks[0], (HID, 8), jnp.float32),
        "fc_b":   scale * jax.random.normal(ks[1], (HID,), jnp.float32),
        "fc1_w":  scale * jax.random.normal(ks[2], (GATES, HID), jnp.float32),
        "fc1_b":  scale * jax.random.normal(ks[3], (GATES,), jnp.float32),
        "head_w": scale * jax.random.normal(ks[4], (NUM_CLASSES, NUM_FEAT), jnp.float32),
        "head_b": scale * jax.random.normal(ks[5], (NUM_CLASSES,), jnp.float32),
        # stand-in backbone projections (cat_net not provided)
        "bb_w1":  scale * jax.random.normal(ks[6], (3, D1), jnp.float32),
        "bb_w2":  scale * jax.random.normal(ks[7], (3, D2), jnp.float32),
    }


def standin_backbone(x_nchw, params):
    # x: (B, 3, H, W) NCHW -> global average pool -> two linear projections
    pooled = jnp.mean(x_nchw, axis=(2, 3))               # (B, 3)
    x1 = pooled @ params["bb_w1"]                        # (B, D1)
    x2 = pooled @ params["bb_w2"]                        # (B, D2)
    return x1, x2


def nima_ref(x1, x2, p):
    def stats(v):
        return jnp.stack(
            [v.max(axis=1), v.min(axis=1), v.mean(axis=1),
             jnp.std(v, axis=1, ddof=1)], axis=1)
    x_in = jnp.concatenate([stats(x1), stats(x2)], axis=1)      # (B, 8)
    h = jnp.tanh(x_in @ p["fc_w"].T + p["fc_b"])
    g = jax.nn.sigmoid(h @ p["fc1_w"].T + p["fc1_b"])
    x1s = x1 * g[:, 0:1]
    x2s = x2 * g[:, 1:2]
    xc = jnp.concatenate([x1s, x2s], axis=1)
    logits = jnp.maximum(xc, 0.0) @ p["head_w"].T + p["head_b"]
    return jax.nn.softmax(logits, axis=1)


if __name__ == "__main__":
    key = jax.random.PRNGKey(0)
    pkey, xkey = jax.random.split(key)
    params = init_params(pkey)
    prep = prepare_params(params)            # one-time weight prep

    # small NCHW image input, consistent with a conv backbone front-end
    x = jax.random.normal(xkey, (2, 3, 16, 16), jnp.float32)
    x1, x2 = standin_backbone(x, params)

    run = jax.jit(functools.partial(nima_pallas, tb=256))
    out = run(x1, x2, prep)
    out = jax.block_until_ready(out)

    # reference on the same bf16-quantized features (bf16 transport is the only
    # intentional precision difference vs the pure-f32 torch forward)
    x1q = x1.astype(jnp.bfloat16).astype(jnp.float32)
    x2q = x2.astype(jnp.bfloat16).astype(jnp.float32)
    ref = nima_ref(x1q, x2q, params)

    assert out.shape == (2, NUM_CLASSES)
    assert jnp.allclose(out, ref, rtol=1e-5, atol=1e-5), (out, ref)
    # softmax rows sum to 1
    assert jnp.allclose(out.sum(axis=1), jnp.ones((2,)), atol=1e-5)

    print("KERNEL_OK")
</pallas_src>

<mosaic_0001>
module attributes {stable_mosaic.version = 11 : i64} {
  func.func @_nima_kernel(%arg0: i32, %arg1: memref<8x2048xbf16, #tpu.memory_space<vmem>>, %arg2: memref<8x1633xbf16, #tpu.memory_space<vmem>>, %arg3: memref<8x64xf32, #tpu.memory_space<vmem>>, %arg4: memref<1x64xf32, #tpu.memory_space<vmem>>, %arg5: memref<2x64xf32, #tpu.memory_space<vmem>>, %arg6: memref<1x2xf32, #tpu.memory_space<vmem>>, %arg7: memref<2048x10xf32, #tpu.memory_space<vmem>>, %arg8: memref<1633x10xf32, #tpu.memory_space<vmem>>, %arg9: memref<1x10xf32, #tpu.memory_space<vmem>>, %arg10: memref<8x10xf32, #tpu.memory_space<vmem>>) attributes {dimension_semantics = [#tpu.dimension_semantics<parallel>], iteration_bounds = array<i64: 1>, scalar_prefetch = 0 : i64, scratch_operands = 0 : i64, tpu.core_type = #tpu.core_type<tc>, window_params = [{transform_indices = @transform_0, window_bounds = array<i64: 8, 2048>}, {transform_indices = @transform_1, window_bounds = array<i64: 8, 1633>}, {pipeline_mode = #tpu.pipeline_mode<synchronous>, transform_indices = @transform_2, window_bounds = array<i64: 8, 64>}, {pipeline_mode = #tpu.pipeline_mode<synchronous>, transform_indices = @transform_3, window_bounds = array<i64: 1, 64>}, {pipeline_mode = #tpu.pipeline_mode<synchronous>, transform_indices = @transform_4, window_bounds = array<i64: 2, 64>}, {pipeline_mode = #tpu.pipeline_mode<synchronous>, transform_indices = @transform_5, window_bounds = array<i64: 1, 2>}, {pipeline_mode = #tpu.pipeline_mode<synchronous>, transform_indices = @transform_6, window_bounds = array<i64: 2048, 10>}, {pipeline_mode = #tpu.pipeline_mode<synchronous>, transform_indices = @transform_7, window_bounds = array<i64: 1633, 10>}, {pipeline_mode = #tpu.pipeline_mode<synchronous>, transform_indices = @transform_8, window_bounds = array<i64: 1, 10>}, {transform_indices = @transform_9, window_bounds = array<i64: 8, 10>}]} {
    %c0 = arith.constant 0 : index
    %c0_0 = arith.constant 0 : index
    %0 = vector.load %arg1[%c0, %c0_0] : memref<8x2048xbf16, #tpu.memory_space<vmem>>, vector<8x2048xbf16>
    %1 = arith.extf %0 : vector<8x2048xbf16> to vector<8x2048xf32>
    %c0_1 = arith.constant 0 : index
    %c0_2 = arith.constant 0 : index
    %2 = vector.load %arg2[%c0_1, %c0_2] : memref<8x1633xbf16, #tpu.memory_space<vmem>>, vector<8x1633xbf16>
    %3 = arith.extf %2 : vector<8x1633xbf16> to vector<8x1633xf32>
    %cst = arith.constant dense<0xFF800000> : vector<8xf32>
    %4 = vector.multi_reduction <maximumf>, %1, %cst [1] : vector<8x2048xf32> to vector<8xf32>
    %5 = vector.shape_cast %4 : vector<8xf32> to vector<8x1xf32>
    %cst_3 = arith.constant dense<0x7F800000> : vector<8xf32>
    %6 = vector.multi_reduction <minimumf>, %1, %cst_3 [1] : vector<8x2048xf32> to vector<8xf32>
    %7 = vector.shape_cast %6 : vector<8xf32> to vector<8x1xf32>
    %cst_4 = arith.constant dense<0.000000e+00> : vector<8xf32>
    %8 = vector.multi_reduction <add>, %1, %cst_4 [1] : vector<8x2048xf32> to vector<8xf32>
    %9 = vector.shape_cast %8 : vector<8xf32> to vector<8x1xf32>
    %10 = arith.mulf %1, %1 : vector<8x2048xf32>
    %cst_5 = arith.constant dense<0.000000e+00> : vector<8xf32>
    %11 = vector.multi_reduction <add>, %10, %cst_5 [1] : vector<8x2048xf32> to vector<8xf32>
    %12 = vector.shape_cast %11 : vector<8xf32> to vector<8x1xf32>
    %cst_6 = arith.constant 4.8828125E-4 : f32
    %13 = vector.broadcast %cst_6 : f32 to vector<8x1xf32>
    %14 = arith.mulf %9, %13 : vector<8x1xf32>
    %cst_7 = arith.constant 2.048000e+03 : f32
    %15 = vector.broadcast %cst_7 : f32 to vector<8x1xf32>
    %16 = arith.mulf %15, %14 : vector<8x1xf32>
    %17 = arith.mulf %16, %14 : vector<8x1xf32>
    %18 = arith.subf %12, %17 : vector<8x1xf32>
    %cst_8 = arith.constant 0.000000e+00 : f32
    %19 = vector.broadcast %cst_8 : f32 to vector<8x1xf32>
    %20 = arith.maximumf %18, %19 : vector<8x1xf32>
    %cst_9 = arith.constant 4.88519785E-4 : f32
    %21 = vector.broadcast %cst_9 : f32 to vector<8x1xf32>
    %22 = arith.mulf %20, %21 : vector<8x1xf32>
    %23 = math.sqrt %22 : vector<8x1xf32>
    %cst_10 = arith.constant dense<0xFF800000> : vector<8xf32>
    %24 = vector.multi_reduction <maximumf>, %3, %cst_10 [1] : vector<8x1633xf32> to vector<8xf32>
    %25 = vector.shape_cast %24 : vector<8xf32> to vector<8x1xf32>
    %cst_11 = arith.constant dense<0x7F800000> : vector<8xf32>
    %26 = vector.multi_reduction <minimumf>, %3, %cst_11 [1] : vector<8x1633xf32> to vector<8xf32>
    %27 = vector.shape_cast %26 : vector<8xf32> to vector<8x1xf32>
    %cst_12 = arith.constant dense<0.000000e+00> : vector<8xf32>
    %28 = vector.multi_reduction <add>, %3, %cst_12 [1] : vector<8x1633xf32> to vector<8xf32>
    %29 = vector.shape_cast %28 : vector<8xf32> to vector<8x1xf32>
    %30 = arith.mulf %3, %3 : vector<8x1633xf32>
    %cst_13 = arith.constant dense<0.000000e+00> : vector<8xf32>
    %31 = vector.multi_reduction <add>, %30, %cst_13 [1] : vector<8x1633xf32> to vector<8xf32>
    %32 = vector.shape_cast %31 : vector<8xf32> to vector<8x1xf32>
    %cst_14 = arith.constant 6.12369855E-4 : f32
    %33 = vector.broadcast %cst_14 : f32 to vector<8x1xf32>
    %34 = arith.mulf %29, %33 : vector<8x1xf32>
    %cst_15 = arith.constant 1.633000e+03 : f32
    %35 = vector.broadcast %cst_15 : f32 to vector<8x1xf32>
    %36 = arith.mulf %35, %34 : vector<8x1xf32>
    %37 = arith.mulf %36, %34 : vector<8x1xf32>
    %38 = arith.subf %32, %37 : vector<8x1xf32>
    %cst_16 = arith.constant 0.000000e+00 : f32
    %39 = vector.broadcast %cst_16 : f32 to vector<8x1xf32>
    %40 = arith.maximumf %38, %39 : vector<8x1xf32>
    %cst_17 = arith.constant 6.1274512E-4 : f32
    %41 = vector.broadcast %cst_17 : f32 to vector<8x1xf32>
    %42 = arith.mulf %40, %41 : vector<8x1xf32>
    %43 = math.sqrt %42 : vector<8x1xf32>
    %c0_18 = arith.constant 0 : index
    %c0_19 = arith.constant 0 : index
    %44 = vector.load %arg3[%c0_18, %c0_19] : memref<8x64xf32, #tpu.memory_space<vmem>>, vector<8x64xf32>
    %45 = vector.extract_strided_slice %44 {offsets = [0, 0], sizes = [1, 64], strides = [1, 1]} : vector<8x64xf32> to vector<1x64xf32>
    %46 = vector.broadcast %5 : vector<8x1xf32> to vector<8x64xf32>
    %47 = vector.broadcast %45 : vector<1x64xf32> to vector<8x64xf32>
    %48 = arith.mulf %46, %47 : vector<8x64xf32>
    %49 = vector.extract_strided_slice %44 {offsets = [1, 0], sizes = [1, 64], strides = [1, 1]} : vector<8x64xf32> to vector<1x64xf32>
    %50 = vector.broadcast %7 : vector<8x1xf32> to vector<8x64xf32>
    %51 = vector.broadcast %49 : vector<1x64xf32> to vector<8x64xf32>
    %52 = arith.mulf %50, %51 : vector<8x64xf32>
    %53 = arith.addf %48, %52 : vector<8x64xf32>
    %54 = vector.extract_strided_slice %44 {offsets = [2, 0], sizes = [1, 64], strides = [1, 1]} : vector<8x64xf32> to vector<1x64xf32>
    %55 = vector.broadcast %14 : vector<8x1xf32> to vector<8x64xf32>
    %56 = vector.broadcast %54 : vector<1x64xf32> to vector<8x64xf32>
    %57 = arith.mulf %55, %56 : vector<8x64xf32>
    %58 = arith.addf %53, %57 : vector<8x64xf32>
    %59 = vector.extract_strided_slice %44 {offsets = [3, 0], sizes = [1, 64], strides = [1, 1]} : vector<8x64xf32> to vector<1x64xf32>
    %60 = vector.broadcast %23 : vector<8x1xf32> to vector<8x64xf32>
    %61 = vector.broadcast %59 : vector<1x64xf32> to vector<8x64xf32>
    %62 = arith.mulf %60, %61 : vector<8x64xf32>
    %63 = arith.addf %58, %62 : vector<8x64xf32>
    %64 = vector.extract_strided_slice %44 {offsets = [4, 0], sizes = [1, 64], strides = [1, 1]} : vector<8x64xf32> to vector<1x64xf32>
    %65 = vector.broadcast %25 : vector<8x1xf32> to vector<8x64xf32>
    %66 = vector.broadcast %64 : vector<1x64xf32> to vector<8x64xf32>
    %67 = arith.mulf %65, %66 : vector<8x64xf32>
    %68 = arith.addf %63, %67 : vector<8x64xf32>
    %69 = vector.extract_strided_slice %44 {offsets = [5, 0], sizes = [1, 64], strides = [1, 1]} : vector<8x64xf32> to vector<1x64xf32>
    %70 = vector.broadcast %27 : vector<8x1xf32> to vector<8x64xf32>
    %71 = vector.broadcast %69 : vector<1x64xf32> to vector<8x64xf32>
    %72 = arith.mulf %70, %71 : vector<8x64xf32>
    %73 = arith.addf %68, %72 : vector<8x64xf32>
    %74 = vector.extract_strided_slice %44 {offsets = [6, 0], sizes = [1, 64], strides = [1, 1]} : vector<8x64xf32> to vector<1x64xf32>
    %75 = vector.broadcast %34 : vector<8x1xf32> to vector<8x64xf32>
    %76 = vector.broadcast %74 : vector<1x64xf32> to vector<8x64xf32>
    %77 = arith.mulf %75, %76 : vector<8x64xf32>
    %78 = arith.addf %73, %77 : vector<8x64xf32>
    %79 = vector.extract_strided_slice %44 {offsets = [7, 0], sizes = [1, 64], strides = [1, 1]} : vector<8x64xf32> to vector<1x64xf32>
    %80 = vector.broadcast %43 : vector<8x1xf32> to vector<8x64xf32>
    %81 = vector.broadcast %79 : vector<1x64xf32> to vector<8x64xf32>
    %82 = arith.mulf %80, %81 : vector<8x64xf32>
    %83 = arith.addf %78, %82 : vector<8x64xf32>
    %c0_20 = arith.constant 0 : index
    %c0_21 = arith.constant 0 : index
    %84 = vector.load %arg4[%c0_20, %c0_21] : memref<1x64xf32, #tpu.memory_space<vmem>>, vector<1x64xf32>
    %85 = vector.broadcast %84 : vector<1x64xf32> to vector<8x64xf32>
    %86 = arith.addf %83, %85 : vector<8x64xf32>
    %87 = math.tanh %86 : vector<8x64xf32>
    %c0_22 = arith.constant 0 : index
    %c0_23 = arith.constant 0 : index
    %88 = vector.load %arg5[%c0_22, %c0_23] : memref<2x64xf32, #tpu.memory_space<vmem>>, vector<2x64xf32>
    %89 = vector.extract_strided_slice %88 {offsets = [0, 0], sizes = [1, 64], strides = [1, 1]} : vector<2x64xf32> to vector<1x64xf32>
    %90 = vector.broadcast %89 : vector<1x64xf32> to vector<8x64xf32>
    %91 = arith.mulf %87, %90 : vector<8x64xf32>
    %cst_24 = arith.constant dense<0.000000e+00> : vector<8xf32>
    %92 = vector.multi_reduction <add>, %91, %cst_24 [1] : vector<8x64xf32> to vector<8xf32>
    %93 = vector.shape_cast %92 : vector<8xf32> to vector<8x1xf32>
    %c0_25 = arith.constant 0 : index
    %c0_26 = arith.constant 0 : index
    %94 = vector.load %arg6[%c0_25, %c0_26] : memref<1x2xf32, #tpu.memory_space<vmem>>, vector<1x1xf32>
    %95 = vector.broadcast %94 : vector<1x1xf32> to vector<8x1xf32>
    %96 = arith.addf %93, %95 : vector<8x1xf32>
    %97 = arith.negf %96 : vector<8x1xf32>
    %98 = math.exp %97 : vector<8x1xf32>
    %cst_27 = arith.constant 1.000000e+00 : f32
    %99 = vector.broadcast %cst_27 : f32 to vector<8x1xf32>
    %100 = arith.addf %99, %98 : vector<8x1xf32>
    %101 = arith.divf %99, %100 : vector<8x1xf32>
    %102 = vector.extract_strided_slice %88 {offsets = [1, 0], sizes = [1, 64], strides = [1, 1]} : vector<2x64xf32> to vector<1x64xf32>
    %103 = vector.broadcast %102 : vector<1x64xf32> to vector<8x64xf32>
    %104 = arith.mulf %87, %103 : vector<8x64xf32>
    %cst_28 = arith.constant dense<0.000000e+00> : vector<8xf32>
    %105 = vector.multi_reduction <add>, %104, %cst_28 [1] : vector<8x64xf32> to vector<8xf32>
    %106 = vector.shape_cast %105 : vector<8xf32> to vector<8x1xf32>
    %c0_29 = arith.constant 0 : index
    %c1 = arith.constant 1 : index
    %107 = vector.load %arg6[%c0_29, %c1] : memref<1x2xf32, #tpu.memory_space<vmem>>, vector<1x1xf32>
    %108 = vector.broadcast %107 : vector<1x1xf32> to vector<8x1xf32>
    %109 = arith.addf %106, %108 : vector<8x1xf32>
    %110 = arith.negf %109 : vector<8x1xf32>
    %111 = math.exp %110 : vector<8x1xf32>
    %cst_30 = arith.constant 1.000000e+00 : f32
    %112 = vector.broadcast %cst_30 : f32 to vector<8x1xf32>
    %113 = arith.addf %112, %111 : vector<8x1xf32>
    %114 = arith.divf %112, %113 : vector<8x1xf32>
    %cst_31 = arith.constant 0.000000e+00 : f32
    %115 = vector.broadcast %cst_31 : f32 to vector<8x2048xf32>
    %116 = arith.maximumf %1, %115 : vector<8x2048xf32>
    %cst_32 = arith.constant 0.000000e+00 : f32
    %117 = vector.broadcast %cst_32 : f32 to vector<8x1633xf32>
    %118 = arith.maximumf %3, %117 : vector<8x1633xf32>
    %c0_33 = arith.constant 0 : index
    %c0_34 = arith.constant 0 : index
    %119 = vector.load %arg7[%c0_33, %c0_34] : memref<2048x10xf32, #tpu.memory_space<vmem>>, vector<2048x10xf32>
    %cst_35 = arith.constant dense<0.000000e+00> : vector<8x10xf32>
    %120 = tpu.matmul %116, %119, %cst_35 {dimension_numbers = #tpu.dot_dimension_numbers<[1], [0], [0], [1], [0, 0, 1, 1], [], []>} : vector<8x2048xf32>, vector<2048x10xf32>, vector<8x10xf32> -> vector<8x10xf32>
    %c0_36 = arith.constant 0 : index
    %c0_37 = arith.constant 0 : index
    %121 = vector.load %arg8[%c0_36, %c0_37] : memref<1633x10xf32, #tpu.memory_space<vmem>>, vector<1633x10xf32>
    %cst_38 = arith.constant dense<0.000000e+00> : vector<8x10xf32>
    %122 = tpu.matmul %118, %121, %cst_38 {dimension_numbers = #tpu.dot_dimension_numbers<[1], [0], [0], [1], [0, 0, 1, 1], [], []>} : vector<8x1633xf32>, vector<1633x10xf32>, vector<8x10xf32> -> vector<8x10xf32>
    %123 = vector.broadcast %101 : vector<8x1xf32> to vector<8x10xf32>
    %124 = arith.mulf %123, %120 : vector<8x10xf32>
    %125 = vector.broadcast %114 : vector<8x1xf32> to vector<8x10xf32>
    %126 = arith.mulf %125, %122 : vector<8x10xf32>
    %127 = arith.addf %124, %126 : vector<8x10xf32>
    %c0_39 = arith.constant 0 : index
    %c0_40 = arith.constant 0 : index
    %128 = vector.load %arg9[%c0_39, %c0_40] : memref<1x10xf32, #tpu.memory_space<vmem>>, vector<1x10xf32>
    %129 = vector.broadcast %128 : vector<1x10xf32> to vector<8x10xf32>
    %130 = arith.addf %127, %129 : vector<8x10xf32>
    %cst_41 = arith.constant dense<0xFF800000> : vector<8xf32>
    %131 = vector.multi_reduction <maximumf>, %130, %cst_41 [1] : vector<8x10xf32> to vector<8xf32>
    %132 = vector.shape_cast %131 : vector<8xf32> to vector<8x1xf32>
    %133 = vector.broadcast %132 : vector<8x1xf32> to vector<8x10xf32>
    %134 = arith.subf %130, %133 : vector<8x10xf32>
    %135 = math.exp %134 : vector<8x10xf32>
    %cst_42 = arith.constant dense<0.000000e+00> : vector<8xf32>
    %136 = vector.multi_reduction <add>, %135, %cst_42 [1] : vector<8x10xf32> to vector<8xf32>
    %137 = vector.shape_cast %136 : vector<8xf32> to vector<8x1xf32>
    %138 = tpu.reciprocal %137 : vector<8x1xf32> -> vector<8x1xf32>
    %139 = vector.broadcast %138 : vector<8x1xf32> to vector<8x10xf32>
    %140 = arith.mulf %135, %139 : vector<8x10xf32>
    %c0_43 = arith.constant 0 : index
    %c0_44 = arith.constant 0 : index
    %141 = vector.load %arg10[%c0_43, %c0_44] : memref<8x10xf32, #tpu.memory_space<vmem>>, vector<8x10xf32>
    tpu.vector_store %arg10[%c0_43, %c0_44], %140 {strides = array<i32>} : memref<8x10xf32, #tpu.memory_space<vmem>>, vector<8x10xf32>,
    return
  }
  func.func @transform_0(%arg0: i32) -> (i32, i32) {
    %c0_i32 = arith.constant 0 : i32
    %c0_i32_0 = arith.constant 0 : i32
    return %arg0, %c0_i32 : i32, i32
  }
  func.func @transform_1(%arg0: i32) -> (i32, i32) {
    %c0_i32 = arith.constant 0 : i32
    %c0_i32_0 = arith.constant 0 : i32
    return %arg0, %c0_i32 : i32, i32
  }
  func.func @transform_2(%arg0: i32) -> (i32, i32) {
    %c0_i32 = arith.constant 0 : i32
    %c0_i32_0 = arith.constant 0 : i32
    %c0_i32_1 = arith.constant 0 : i32
    return %c0_i32, %c0_i32_0 : i32, i32
  }
  func.func @transform_3(%arg0: i32) -> (i32, i32) {
    %c0_i32 = arith.constant 0 : i32
    %c0_i32_0 = arith.constant 0 : i32
    %c0_i32_1 = arith.constant 0 : i32
    return %c0_i32, %c0_i32_0 : i32, i32
  }
  func.func @transform_4(%arg0: i32) -> (i32, i32) {
    %c0_i32 = arith.constant 0 : i32
    %c0_i32_0 = arith.constant 0 : i32
    %c0_i32_1 = arith.constant 0 : i32
    return %c0_i32, %c0_i32_0 : i32, i32
  }
  func.func @transform_5(%arg0: i32) -> (i32, i32) {
    %c0_i32 = arith.constant 0 : i32
    %c0_i32_0 = arith.constant 0 : i32
    %c0_i32_1 = arith.constant 0 : i32
    return %c0_i32, %c0_i32_0 : i32, i32
  }
  func.func @transform_6(%arg0: i32) -> (i32, i32) {
    %c0_i32 = arith.constant 0 : i32
    %c0_i32_0 = arith.constant 0 : i32
    %c0_i32_1 = arith.constant 0 : i32
    return %c0_i32, %c0_i32_0 : i32, i32
  }
  func.func @transform_7(%arg0: i32) -> (i32, i32) {
    %c0_i32 = arith.constant 0 : i32
    %c0_i32_0 = arith.constant 0 : i32
    %c0_i32_1 = arith.constant 0 : i32
    return %c0_i32, %c0_i32_0 : i32, i32
  }
  func.func @transform_8(%arg0: i32) -> (i32, i32) {
    %c0_i32 = arith.constant 0 : i32
    %c0_i32_0 = arith.constant 0 : i32
    %c0_i32_1 = arith.constant 0 : i32
    return %c0_i32, %c0_i32_0 : i32, i32
  }
  func.func @transform_9(%arg0: i32) -> (i32, i32) {
    %c0_i32 = arith.constant 0 : i32
    %c0_i32_0 = arith.constant 0 : i32
    return %arg0, %c0_i32 : i32, i32
  }
}

</mosaic_0001>

<bundles_post_ra>
// kernel: nima_pallas.1
= control target key start
LH: loop header
LB: loop body
LE: loop exit
PB: predicated region body
PF: predicated region fallthrough
CT: control target
= control target key end

     0   :  { %vm181_vm0 = vcmask 793600   ;;  %vm2974_vm4 = vmmov 0   ;;  %vm1409_vm6 = vcmask 1040384   ;;  %vm323_vm7 = vcmask 523264   ;;  %s4833_s6 = inlined_call_operand.vmem [shape: f32[2048,10], index: 6, kind: input, shape index: {}]   ;;  %s4834_s1 = inlined_call_operand.vmem [shape: bf16[8,1633], index: 1, kind: input, shape index: {}]   ;;  %s4835_s0 = inlined_call_operand.vmem [shape: bf16[8,2048], index: 0, kind: input, shape index: {}]   ;;  %s4836_s7 = inlined_call_operand.vmem [shape: f32[1633,10], index: 7, kind: input, shape index: {}]   ;;  %s4837_s2 = inlined_call_operand.vmem [shape: f32[8,64], index: 2, kind: input, shape index: {}]   ;;  %s4838_s3 = inlined_call_operand.vmem [shape: f32[1,64], index: 3, kind: input, shape index: {}]   ;;  %s4839_s4 = inlined_call_operand.vmem [shape: f32[2,64], index: 4, kind: input, shape index: {}]   ;;  %s4840_s5 = inlined_call_operand.vmem [shape: f32[1,2], index: 5, kind: input, shape index: {}]   ;;  %s4841_s8 = inlined_call_operand.vmem [shape: f32[1,10], index: 8, kind: input, shape index: {}]   ;;  %s4842_s9 = inlined_call_operand.vmem [shape: f32[8,10], index: 9, kind: output, shape index: {}]  }
   0x1   :  { %v401_v0 = vld [vmem:[%s4833_s6 + $0x80] sm:$0xff]  ;;  %v402_v1 = vld [vmem:[%s4833_s6 + $0x88] sm:$0xff]  ;;  %v403_v11 = vld [vmem:[%s4833_s6 + $0x90] sm:$0xff]  ;;  %vm1924_vm8 = vcmask 80896  }
   0x2   :  { %v385_v2 = vld [vmem:[%s4833_s6] sm:$0xff]  ;;  %v2481_v3 = vpack.c.bf16 %v402_v1, %v401_v0  ;;  %v386_v4 = vld [vmem:[%s4833_s6 + $0x8] sm:$0xff]  ;;  %v404_v13 = vld [vmem:[%s4833_s6 + $0x98] sm:$0xff] }
   0x3   :  { %v433_v5 = vld [vmem:[%s4833_s6 + $0x180] sm:$0xff]  ;;  %v434_v6 = vld [vmem:[%s4833_s6 + $0x188] sm:$0xff]  ;;  %v2483_v7 = vpack.c.bf16 %v386_v4, %v385_v2  ;;  %v387_v14 = vld [vmem:[%s4833_s6 + $0x10] sm:$0xff]  ;;  %v2485_v16 = vpack.c.bf16 %v404_v13, %v403_v11 }
   0x4   :  { %v2513_v8 = vpack.c.bf16 %v434_v6, %v433_v5  ;;  %v417_v9 = vld [vmem:[%s4833_s6 + $0x100] sm:$0xff]  ;;  %v418_v10 = vld [vmem:[%s4833_s6 + $0x108] sm:$0xff]  ;;  %2482 = vmatprep.subr.bf16.mxu0 %v2481_v3  ;;  %v388_v15 = vld [vmem:[%s4833_s6 + $0x18] sm:$0xff] }
   0x5   :  { %v2515_v12 = vpack.c.bf16 %v418_v10, %v417_v9  ;;  %2484 = vmatpush3.bf16.msra.mxu0 %v2483_v7  ;;  %v2487_v17 = vpack.c.bf16 %v388_v15, %v387_v14  ;;  %v435_v18 = vld [vmem:[%s4833_s6 + $0x190] sm:$0xff]  ;;  %v436_v19 = vld [vmem:[%s4833_s6 + $0x198] sm:$0xff]  ;;  %v405_v23 = vld [vmem:[%s4833_s6 + $0xa0] sm:$0xff] }
   0x6   :  { %2514 = vmatprep.subr.bf16.mxu1 %v2513_v8  ;;  %v419_v20 = vld [vmem:[%s4833_s6 + $0x110] sm:$0xff]  ;;  %v2517_v21 = vpack.c.bf16 %v436_v19, %v435_v18  ;;  %v420_v22 = vld [vmem:[%s4833_s6 + $0x118] sm:$0xff]  ;;  %v406_v24 = vld [vmem:[%s4833_s6 + $0xa8] sm:$0xff]  ;;  %2486 = vmatprep.subr.bf16.mxu0 %v2485_v16 }
   0x7   :  { %2516 = vmatpush3.bf16.msra.mxu1 %v2515_v12  ;;  %v2519_v25 = vpack.c.bf16 %v420_v22, %v419_v20  ;;  %v2489_v26 = vpack.c.bf16 %v406_v24, %v405_v23  ;;  %v389_v27 = vld [vmem:[%s4833_s6 + $0x20] sm:$0xff]  ;;  %v390_v28 = vld [vmem:[%s4833_s6 + $0x28] sm:$0xff]  ;;  %v407_v35 = vld [vmem:[%s4833_s6 + $0xb0] sm:$0xff] }
   0x8   :  { %v437_v29 = vld [vmem:[%s4833_s6 + $0x1a0] sm:$0xff]  ;;  %2518 = vmatprep.subr.bf16.mxu1 %v2517_v21  ;;  %v438_v30 = vld [vmem:[%s4833_s6 + $0x1a8] sm:$0xff]  ;;  %v2491_v33 = vpack.c.bf16 %v390_v28, %v389_v27  ;;  %v408_v36 = vld [vmem:[%s4833_s6 + $0xb8] sm:$0xff] }
   0x9   :  { %v421_v31 = vld [vmem:[%s4833_s6 + $0x120] sm:$0xff]  ;;  %v422_v32 = vld [vmem:[%s4833_s6 + $0x128] sm:$0xff]  ;;  %2488 = vmatpush3.bf16.msra.mxu0 %v2487_v17  ;;  %v2521_v34 = vpack.c.bf16 %v438_v30, %v437_v29  ;;  %v391_v37 = vld [vmem:[%s4833_s6 + $0x30] sm:$0xff]  ;;  %v2493_v39 = vpack.c.bf16 %v408_v36, %v407_v35 }
   0xa   :  { %2490 = vmatprep.subr.bf16.mxu0 %v2489_v26  ;;  %v2523_v38 = vpack.c.bf16 %v422_v32, %v421_v31  ;;  %v392_v40 = vld [vmem:[%s4833_s6 + $0x38] sm:$0xff]  ;;  %v439_v41 = vld [vmem:[%s4833_s6 + $0x1b0] sm:$0xff]  ;;  %v409_v46 = vld [vmem:[%s4833_s6 + $0xc0] sm:$0xff] }
   0xb   :  { %2520 = vmatpush3.bf16.msra.mxu1 %v2519_v25  ;;  %v440_v42 = vld [vmem:[%s4833_s6 + $0x1b8] sm:$0xff]  ;;  %v423_v44 = vld [vmem:[%s4833_s6 + $0x130] sm:$0xff]  ;;  %v410_v47 = vld [vmem:[%s4833_s6 + $0xc8] sm:$0xff]  ;;  %v2495_v48 = vpack.c.bf16 %v392_v40, %v391_v37 }
   0xc   :  { %2522 = vmatprep.subr.bf16.mxu1 %v2521_v34  ;;  %v2525_v43 = vpack.c.bf16 %v440_v42, %v439_v41  ;;  %v424_v45 = vld [vmem:[%s4833_s6 + $0x138] sm:$0xff]  ;;  %v393_v49 = vld [vmem:[%s4833_s6 + $0x40] sm:$0xff]  ;;  %v442_v51 = vld [vmem:[%s4833_s6 + $0x1c8] sm:$0xff]  ;;  %v2497_v53 = vpack.c.bf16 %v410_v47, %v409_v46 }
   0xd   :  { %2492 = vmatpush3.bf16.msra.mxu0 %v2491_v33  ;;  %v441_v50 = vld [vmem:[%s4833_s6 + $0x1c0] sm:$0xff]  ;;  %v2527_v52 = vpack.c.bf16 %v424_v45, %v423_v44  ;;  %v394_v54 = vld [vmem:[%s4833_s6 + $0x48] sm:$0xff]  ;;  %v411_v58 = vld [vmem:[%s4833_s6 + $0xd0] sm:$0xff] }
   0xe   :  { %2494 = vmatprep.subr.bf16.mxu0 %v2493_v39  ;;  %v425_v55 = vld [vmem:[%s4833_s6 + $0x140] sm:$0xff]  ;;  %v426_v56 = vld [vmem:[%s4833_s6 + $0x148] sm:$0xff]  ;;  %v2529_v57 = vpack.c.bf16 %v442_v51, %v441_v50  ;;  %v412_v59 = vld [vmem:[%s4833_s6 + $0xd8] sm:$0xff]  ;;  %v2499_v0 = vpack.c.bf16 %v394_v54, %v393_v49 }
   0xf   :  { %2524 = vmatpush3.bf16.msra.mxu1 %v2523_v38  ;;  %v395_v60 = vld [vmem:[%s4833_s6 + $0x50] sm:$0xff]  ;;  %v396_v61 = vld [vmem:[%s4833_s6 + $0x58] sm:$0xff]  ;;  %v56_v3 = vld [vmem:[%s4834_s1] sm:$0xff]  ;;  %v2531_v4 = vpack.c.bf16 %v426_v56, %v425_v55  ;;  %v2501_v5 = vpack.c.bf16 %v412_v59, %v411_v58 }
  0x10   :  { %2526 = vmatprep.subr.bf16.mxu1 %v2525_v43  ;;  %v443_v62 = vld [vmem:[%s4833_s6 + $0x1d0] sm:$0xff]  ;;  %v444_v63 = vld [vmem:[%s4833_s6 + $0x1d8] sm:$0xff]  ;;  %v413_v6 = vld [vmem:[%s4833_s6 + $0xe0] sm:$0xff]  ;;  %v3184_v9 = vunpack.c.l.bf16 %v56_v3  ;;  %v3186_v10 = vunpack.c.h.bf16 %v56_v3  ;;  %v2503_v16 = vpack.c.bf16 %v396_v61, %v395_v60 }
  0x11   :  { %2496 = vmatpush3.bf16.msra.mxu0 %v2495_v48  ;;  %v427_v1 = vld [vmem:[%s4833_s6 + $0x150] sm:$0xff]  ;;  %v428_v2 = vld [vmem:[%s4833_s6 + $0x158] sm:$0xff]  ;;  %v414_v7 = vld [vmem:[%s4833_s6 + $0xe8] sm:$0xff]  ;;  %v2533_v11 = vpack.c.bf16 %v444_v63, %v443_v62 }
  0x12   :  { %2498 = vmatprep.subr.bf16.mxu0 %v2497_v53  ;;  %v57_v8 = vld [vmem:[%s4834_s1 + $0x8] sm:$0xff]  ;;  %v58_v12 = vld [vmem:[%s4834_s1 + $0x10] sm:$0xff]  ;;  %v59_v13 = vld [vmem:[%s4834_s1 + $0x18] sm:$0xff]  ;;  %v2535_v20 = vpack.c.bf16 %v428_v2, %v427_v1  ;;  %v2505_v21 = vpack.c.bf16 %v414_v7, %v413_v6  ;;  %v204_v23 = vadd.f32 %v3186_v10, %v3184_v9  ;;  %v219_v45 = vmul.f32 %v3184_v9, %v3184_v9 }
  0x13   :  { %2528 = vmatpush3.bf16.msra.mxu1 %v2527_v52  ;;  %v62_v14 = vld [vmem:[%s4834_s1 + $0x30] sm:$0xf]  ;;  %v3197_v15 = vunpack.c.l.bf16 %v57_v8  ;;  %v60_v17 = vld [vmem:[%s4834_s1 + $0x20] sm:$0xff]  ;;  %v61_v18 = vld [vmem:[%s4834_s1 + $0x28] sm:$0xff]  ;;  %v3208_v22 = vunpack.c.h.bf16 %v57_v8  ;;  %v3221_v27 = vunpack.c.l.bf16 %v58_v12  ;;  %v3223_v28 = vunpack.c.h.bf16 %v58_v12 }
  0x14   :  { %2530 = vmatprep.subr.bf16.mxu1 %v2529_v57  ;;  %v445_v19 = vld [vmem:[%s4833_s6 + $0x1e0] sm:$0xff]  ;;  %v398_v25 = vld [vmem:[%s4833_s6 + $0x68] sm:$0xff]  ;;  %v3225_v29 = vunpack.c.l.bf16 %v59_v13  ;;  %v3227_v30 = vunpack.c.l.bf16 %v62_v14  ;;  %v415_v33 = vld [vmem:[%s4833_s6 + $0xf0] sm:$0xff]  ;;  %v3238_v34 = vunpack.c.h.bf16 %v59_v13  ;;  %v3240_v35 = vunpack.c.l.bf16 %v60_v17 }
  0x15   :  { %2500 = vmatpush3.bf16.msra.mxu0 %v2499_v0  ;;  %v397_v24 = vld [vmem:[%s4833_s6 + $0x60] sm:$0xff]  ;;  %v446_v26 = vld [vmem:[%s4833_s6 + $0x1e8] sm:$0xff]  ;;  %v205_v36 = vadd.f32 %v204_v23, %v3197_v15  ;;  %v416_v38 = vld [vmem:[%s4833_s6 + $0xf8] sm:$0xff]  ;;  %v3252_v41 = vunpack.c.h.bf16 %v60_v17  ;;  %v3254_v42 = vunpack.c.l.bf16 %v61_v18  ;;  %v220_v46 = vmul.f32 %v3186_v10, %v3186_v10 }
  0x16   :  { %2502 = vmatprep.subr.bf16.mxu0 %v2501_v5  ;;  %v429_v31 = vld [vmem:[%s4833_s6 + $0x160] sm:$0xff]  ;;  %v430_v32 = vld [vmem:[%s4833_s6 + $0x168] sm:$0xff]  ;;  %v2537_v37 = vpack.c.bf16 %v446_v26, %v445_v19  ;;  %v399_v39 = vld [vmem:[%s4833_s6 + $0x70] sm:$0xff]  ;;  %v3266_v47 = vunpack.c.h.bf16 %v61_v18  ;;  %v2507_v49 = vpack.c.bf16 %v398_v25, %v397_v24  ;;  %v3271_v51 = vsel %vm181_vm0, %v3227_v30, 0.0 }
  0x17   :  { %2532 = vmatpush3.bf16.msra.mxu1 %v2531_v4  ;;  %v400_v40 = vld [vmem:[%s4833_s6 + $0x78] sm:$0xff]  ;;  %v447_v43 = vld [vmem:[%s4833_s6 + $0x1f0] sm:$0xff]  ;;  %v206_v48 = vadd.f32 %v205_v36, %v3208_v22  ;;  %v2539_v50 = vpack.c.bf16 %v430_v32, %v429_v31  ;;  %v2509_v52 = vpack.c.bf16 %v416_v38, %v415_v33  ;;  %v221_v54 = vmul.f32 %v3197_v15, %v3197_v15  ;;  %v32_v55 = vld [vmem:[%s4835_s0] sm:$0xff] }
  0x18   :  { %2534 = vmatprep.subr.bf16.mxu1 %v2533_v11  ;;  %v448_v44 = vld [vmem:[%s4833_s6 + $0x1f8] sm:$0xff]  ;;  %v2511_v53 = vpack.c.bf16 %v400_v40, %v399_v39  ;;  %v222_v58 = vmul.f32 %v3208_v22, %v3208_v22  ;;  %v223_v59 = vmul.f32 %v3221_v27, %v3221_v27  ;;  %v33_v60 = vld [vmem:[%s4835_s0 + $0x8] sm:$0xff]  ;;  %v224_v61 = vmul.f32 %v3223_v28, %v3223_v28  ;;  %v36_v1 = vld [vmem:[%s4835_s0 + $0x20] sm:$0xff] }
  0x19   :  { %2504 = vmatpush3.bf16.msra.mxu0 %v2503_v16  ;;  %v207_v56 = vadd.f32 %v206_v48, %v3221_v27  ;;  %v2541_v57 = vpack.c.bf16 %v448_v44, %v447_v43  ;;  %v225_v62 = vmul.f32 %v3225_v29, %v3225_v29  ;;  %v3292_v63 = vmul.f32 %v3238_v34, %v3238_v34  ;;  %v37_v2 = vld [vmem:[%s4835_s0 + $0x28] sm:$0xff]  ;;  %v34_v6 = vld [vmem:[%s4835_s0 + $0x10] sm:$0xff] }
  0x1a   :  { %2506 = vmatprep.subr.bf16.mxu0 %v2505_v21  ;;  %v232_v0 = vadd.f32 %v220_v46, %v219_v45  ;;  %v3303_v4 = vmul.f32 %v3240_v35, %v3240_v35  ;;  %v3307_v5 = vmul.f32 %v3252_v41, %v3252_v41  ;;  %v3312_v7 = vunpack.c.l.bf16 %v32_v55  ;;  %v38_v11 = vld [vmem:[%s4835_s0 + $0x30] sm:$0xff]  ;;  %v432_v21 = vld [vmem:[%s4833_s6 + $0x178] sm:$0xff]  ;;  %v466_v38 = vld [vmem:[%s4833_s6 + $0x288] sm:$0xff] }
  0x1b   :  { %2536 = vmatpush3.bf16.msra.mxu1 %v2535_v20  ;;  %v208_v3 = vadd.f32 %v207_v56, %v3223_v28  ;;  %v3317_v12 = vunpack.c.h.bf16 %v32_v55  ;;  %v3319_v13 = vunpack.c.l.bf16 %v33_v60  ;;  %v3321_v14 = vunpack.c.h.bf16 %v33_v60  ;;  %v431_v20 = vld [vmem:[%s4833_s6 + $0x170] sm:$0xff]  ;;  %v449_v45 = vld [vmem:[%s4833_s6 + $0x200] sm:$0xff]  ;;  %v450_v46 = vld [vmem:[%s4833_s6 + $0x208] sm:$0xff] }
  0x1c   :  { %2538 = vmatprep.subr.bf16.mxu1 %v2537_v37  ;;  %v233_v8 = vadd.f32 %v232_v0, %v221_v54  ;;  %v3324_v17 = vunpack.c.l.bf16 %v36_v1  ;;  %v3326_v18 = vunpack.c.h.bf16 %v36_v1  ;;  %v3328_v19 = vunpack.c.l.bf16 %v37_v2  ;;  %v465_v37 = vld [vmem:[%s4833_s6 + $0x280] sm:$0xff]  ;;  %v498_v54 = vld [vmem:[%s4833_s6 + $0x388] sm:$0xff]  ;;  %v39_v56 = vld [vmem:[%s4835_s0 + $0x38] sm:$0xff] }
  0x1d   :  { %2508 = vmatpush3.bf16.msra.mxu0 %v2507_v49  ;;  %v209_v16 = vadd.f32 %v208_v3, %v3225_v29  ;;  %v3336_v24 = vunpack.c.l.bf16 %v34_v6  ;;  %v3338_v25 = vunpack.c.h.bf16 %v34_v6  ;;  %v3340_v26 = vunpack.c.h.bf16 %v37_v2  ;;  %v35_v0 = vld [vmem:[%s4835_s0 + $0x18] sm:$0xff] }
  0x1e   :  { %2510 = vmatprep.subr.bf16.mxu0 %v2509_v52  ;;  %v234_v23 = vadd.f32 %v233_v8, %v222_v58  ;;  %v80_v32 = vmax.f32 %v3326_v18, %v3324_v17  ;;  %v97_v33 = vmin.f32 %v3326_v18, %v3324_v17  ;;  %v3347_v36 = vunpack.c.l.bf16 %v38_v11 }
  0x1f   :  { %2540 = vmatpush3.bf16.msra.mxu1 %v2539_v50  ;;  %v210_v31 = vadd.f32 %v209_v16, %v3238_v34  ;;  %v3355_v40 = vunpack.c.h.bf16 %v38_v11  ;;  %v110_v43 = vadd.f32 %v3317_v12, %v3312_v7  ;;  %v2543_v44 = vpack.c.bf16 %v432_v21, %v431_v20 }
  0x20   :  { %2542 = vmatprep.subr.bf16.mxu1 %v2541_v57  ;;  %v235_v39 = vadd.f32 %v234_v23, %v223_v59  ;;  %v81_v49 = vmax.f32 %v3328_v19, %v80_v32  ;;  %v98_v50 = vmin.f32 %v3328_v19, %v97_v33  ;;  %v357_v52 = vmax.f32 %v3317_v12, 0.0 }
  0x21   :  { %2512 = vmatpush3.bf16.msra.mxu0 %v2511_v53  ;;  %v211_v48 = vadd.f32 %v210_v31, %v3240_v35  ;;  %v497_v53 = vld [vmem:[%s4833_s6 + $0x380] sm:$0xff]  ;;  %v111_v57 = vadd.f32 %v110_v43, %v3319_v13  ;;  %v2545_v58 = vpack.c.bf16 %v466_v38, %v465_v37  ;;  %v356_v59 = vmax.f32 %v3312_v7, 0.0 }
  0x22   :  { %v236_v55 = vadd.f32 %v235_v39, %v224_v61  ;;  %v82_v1 = vmax.f32 %v3340_v26, %v81_v49  ;;  %v99_v61 = vmin.f32 %v3340_v26, %v98_v50  ;;  %705 = vmatprep.mubr.f32.mxu0 %v357_v52  ;;  %v2547_v2 = vpack.c.bf16 %v450_v46, %v449_v45 }
  0x23   :  { %2544 = vmatpush3.bf16.msra.mxu1 %v2543_v44  ;;  %v212_v60 = vadd.f32 %v211_v48, %v3252_v41  ;;  %v112_v6 = vadd.f32 %v111_v57, %v3321_v14  ;;  %2546 = vmatprep.subr.bf16.mxu0 %v2545_v58  ;;  %v359_v8 = vmax.f32 %v3321_v14, 0.0  ;;  %v2577_v11 = vpack.c.bf16 %v498_v54, %v497_v53  ;;  %v482_v57 = vld [vmem:[%s4833_s6 + $0x308] sm:$0xff]  ;;  %v468_v58 = vld [vmem:[%s4833_s6 + $0x298] sm:$0xff] }
  0x24   :  { %v237_v3 = vadd.f32 %v236_v55, %v225_v62  ;;  %706 = vmatmul.mubr.f32.vlgmr.msra.gmra.mrb[0].mxu0 %v356_v59  ;;  %v83_v20 = vmax.f32 %v3347_v36, %v82_v1  ;;  %v100_v21 = vmin.f32 %v3347_v36, %v99_v61  ;;  %v3391_v23 = vunpack.c.l.bf16 %v39_v56  ;;  %v451_v59 = vld [vmem:[%s4833_s6 + $0x210] sm:$0xff] }
  0x25   :  { %v213_v16 = vadd.f32 %v212_v60, %v3254_v42  ;;  %2548 = vmatpush3.bf16.msra.mxu0 %v2547_v2  ;;  %v3394_v32 = vunpack.c.l.bf16 %v35_v0  ;;  %v113_v62 = vadd.f32 %v112_v6, %v3336_v24  ;;  %775 = vmatprep.mubr.f32.mxu1 %v359_v8  ;;  %v358_v33 = vmax.f32 %v3319_v13, 0.0  ;;  %v452_v2 = vld [vmem:[%s4833_s6 + $0x218] sm:$0xff] }
  0x26   :  { %v238_v31 = vadd.f32 %v237_v3, %v3292_v63  ;;  %2578 = vmatprep.subr.bf16.mxu1 %v2577_v11  ;;  %v229_v38 = vmul.f32 %v3254_v42, %v3254_v42  ;;  %v231_v39 = vmul.f32 %v3227_v30, %v3227_v30  ;;  %v101_v43 = vmin.f32 %v3355_v40, %v100_v21  ;;  %v499_v3 = vld [vmem:[%s4833_s6 + $0x390] sm:$0xff]  ;;  %v500_v6 = vld [vmem:[%s4833_s6 + $0x398] sm:$0xff] }
  0x27   :  { %v214_v37 = vadd.f32 %v213_v16, %v3266_v47  ;;  %v230_v63 = vmul.f32 %v3266_v47, %v3266_v47  ;;  %v3407_v45 = vunpack.c.h.bf16 %v35_v0  ;;  %v114_v46 = vadd.f32 %v113_v62, %v3338_v25  ;;  %776 = vmatmul.mubr.f32.vlgmr.msra.gmra.mrb[0].mxu1 %v358_v33 }
  0x28   :  { %v239_v44 = vadd.f32 %v238_v31, %v3303_v4  ;;  %v84_v49 = vmax.f32 %v3355_v40, %v83_v20  ;;  %v102_v50 = vmin.f32 %v3391_v23, %v101_v43  ;;  %v3413_v52 = vunpack.c.h.bf16 %v39_v56 }
  0x29   :  { %v216_v48 = vadd.f32 %v3271_v51, %v214_v37  ;;  %v115_v54 = vadd.f32 %v114_v46, %v3394_v32  ;;  %v127_v4 = vmul.f32 %v3312_v7, %v3312_v7  ;;  %v128_v55 = vmul.f32 %v3317_v12, %v3317_v12  ;;  %v481_v51 = vld [vmem:[%s4833_s6 + $0x300] sm:$0xff] }
  0x2a   :  { %v240_v53 = vadd.f32 %v239_v44, %v3307_v5  ;;  %v243_v56 = vsel %vm181_vm0, %v231_v39, 0.0  ;;  %v467_v5 = vld [vmem:[%s4833_s6 + $0x290] sm:$0xff]  ;;  %v129_v1 = vmul.f32 %v3319_v13, %v3319_v13  ;;  %v130_v61 = vmul.f32 %v3321_v14, %v3321_v14 }
  0x2b   :  { %217 = vadd.xlane.f32.xlu1 %v216_v48  ;;  %v116_v0 = vadd.f32 %v115_v54, %v3407_v45  ;;  %v3452_v8 = vmax.f32 %v3391_v23, %v84_v49  ;;  %v103_v11 = vmin.f32 %v3413_v52, %v102_v50  ;;  %v131_v16 = vmul.f32 %v3336_v24, %v3336_v24  ;;  %v484_v50 = vld [vmem:[%s4833_s6 + $0x318] sm:$0xff] }
  0x2c   :  { %v241_v60 = vadd.f32 %v240_v53, %v229_v38  ;;  %v132_v20 = vmul.f32 %v3338_v25, %v3338_v25  ;;  %v143_v62 = vadd.f32 %v128_v55, %v127_v4  ;;  %v2579_v33 = vpack.c.bf16 %v482_v57, %v481_v51  ;;  %v469_v55 = vld [vmem:[%s4833_s6 + $0x2a0] sm:$0xff]  ;;  %v470_v51 = vld [vmem:[%s4833_s6 + $0x2a8] sm:$0xff] }
  0x2d   :  { %v117_v31 = vadd.f32 %v116_v0, %v3324_v17  ;;  %v2549_v37 = vpack.c.bf16 %v468_v58, %v467_v5  ;;  %v2551_v38 = vpack.c.bf16 %v452_v2, %v451_v59  ;;  %v2581_v39 = vpack.c.bf16 %v500_v6, %v499_v3  ;;  %v453_v57 = vld [vmem:[%s4833_s6 + $0x220] sm:$0xff]  ;;  %v454_v59 = vld [vmem:[%s4833_s6 + $0x228] sm:$0xff] }
  0x2e   :  { %v242_v21 = vadd.f32 %v241_v60, %v230_v63  ;;  %v93_v43 = vmin.f32 %v3312_v7, %v3336_v24  ;;  %v144_v48 = vadd.f32 %v143_v62, %v129_v1  ;;  %2580 = vmatpush3.bf16.msra.mxu1 %v2579_v33  ;;  %v94_v49 = vmin.f32 %v3317_v12, %v3338_v25  ;;  %v483_v63 = vld [vmem:[%s4833_s6 + $0x310] sm:$0xff]  ;;  %v501_v60 = vld [vmem:[%s4833_s6 + $0x3a0] sm:$0xff]  ;;  %v502_v0 = vld [vmem:[%s4833_s6 + $0x3a8] sm:$0xff] }
  0x2f   :  { %v118_v46 = vadd.f32 %v117_v31, %v3326_v18  ;;  %v133_v53 = vmul.f32 %v3394_v32, %v3394_v32  ;;  %2550 = vmatprep.subr.bf16.mxu0 %v2549_v37  ;;  %2582 = vmatprep.subr.bf16.mxu1 %v2581_v39  ;;  %v95_v4 = vmin.f32 %v3319_v13, %v3394_v32  ;;  %v485_v6 = vld [vmem:[%s4833_s6 + $0x320] sm:$0xff]  ;;  %v471_v33 = vld [vmem:[%s4833_s6 + $0x2b0] sm:$0xff]  ;;  %v472_v37 = vld [vmem:[%s4833_s6 + $0x2b8] sm:$0xff] }
  0x30   :  { %v244_v44 = vadd.f32 %v243_v56, %v242_v21  ;;  %v104_v54 = vmin.f32 %v93_v43, %v103_v11  ;;  %v134_v5 = vmul.f32 %v3407_v45, %v3407_v45  ;;  %v145_v58 = vadd.f32 %v144_v48, %v130_v61  ;;  %2552 = vmatpush3.bf16.msra.mxu0 %v2551_v38  ;;  %v486_v11 = vld [vmem:[%s4833_s6 + $0x328] sm:$0xff]  ;;  %v455_v38 = vld [vmem:[%s4833_s6 + $0x230] sm:$0xff] }
  0x31   :  { %v119_v56 = vadd.f32 %v118_v46, %v3328_v19  ;;  %v86_v1 = vmax.f32 %v3413_v52, %v3452_v8  ;;  %v3500_v2 = vmul.f32 %v3324_v17, %v3324_v17  ;;  %v96_v3 = vmin.f32 %v3321_v14, %v3407_v45  ;;  %v503_v48 = vld [vmem:[%s4833_s6 + $0x3b0] sm:$0xff] }
  0x32   :  { %245 = vadd.xlane.f32.xlu1 %v244_v44  ;;  %v105_v61 = vmin.f32 %v94_v49, %v104_v54  ;;  %v3513_v8 = vmul.f32 %v3326_v18, %v3326_v18  ;;  %v146_v31 = vadd.f32 %v145_v58, %v131_v16  ;;  %v2583_v62 = vpack.c.bf16 %v484_v50, %v483_v63  ;;  %v456_v16 = vld [vmem:[%s4833_s6 + $0x238] sm:$0xff] }
  0x33   :  { %v120_v21 = vadd.f32 %v119_v56, %v3340_v26  ;;  %v2553_v43 = vpack.c.bf16 %v470_v51, %v469_v55  ;;  %v2555_v44 = vpack.c.bf16 %v454_v59, %v453_v57  ;;  %v2585_v46 = vpack.c.bf16 %v502_v0, %v501_v60  ;;  %v504_v49 = vld [vmem:[%s4833_s6 + $0x3b8] sm:$0xff]  ;;  %v473_v55 = vld [vmem:[%s4833_s6 + $0x2c0] sm:$0xff]  ;;  %v474_v51 = vld [vmem:[%s4833_s6 + $0x2c8] sm:$0xff] }
  0x34   :  { %v106_v39 = vmin.f32 %v95_v4, %v105_v61  ;;  %v147_v50 = vadd.f32 %v146_v31, %v132_v20  ;;  %v76_v54 = vmax.f32 %v3312_v7, %v3336_v24  ;;  %2584 = vmatpush3.bf16.msra.mxu1 %v2583_v62  ;;  %v2587_v4 = vpack.c.bf16 %v486_v11, %v485_v6  ;;  %v487_v7 = vld [vmem:[%s4833_s6 + $0x330] sm:$0xff]  ;;  %v488_v58 = vld [vmem:[%s4833_s6 + $0x338] sm:$0xff]  ;;  %v457_v59 = vld [vmem:[%s4833_s6 + $0x240] sm:$0xff] }
  0x35   :  { %v121_v63 = vadd.f32 %v120_v21, %v3347_v36  ;;  %v3544_v57 = vmul.f32 %v3328_v19, %v3328_v19  ;;  %2554 = vmatprep.subr.bf16.mxu0 %v2553_v43  ;;  %2586 = vmatprep.subr.bf16.mxu1 %v2585_v46  ;;  %v2557_v20 = vpack.c.bf16 %v472_v37, %v471_v33  ;;  %v458_v6 = vld [vmem:[%s4833_s6 + $0x248] sm:$0xff]  ;;  %v505_v11 = vld [vmem:[%s4833_s6 + $0x3c0] sm:$0xff]  ;;  %v476_v46 = vld [vmem:[%s4833_s6 + $0x2d8] sm:$0xff] }
  0x36   :  { %v107_v56 = vmin.f32 %v96_v3, %v106_v39  ;;  %v148_v0 = vadd.f32 %v147_v50, %v133_v53  ;;  %2556 = vmatpush3.bf16.msra.mxu0 %v2555_v44  ;;  %v2559_v61 = vpack.c.bf16 %v456_v16, %v455_v38  ;;  %v2589_v3 = vpack.c.bf16 %v504_v49, %v503_v48  ;;  %v506_v21 = vld [vmem:[%s4833_s6 + $0x3c8] sm:$0xff]  ;;  %v489_v33 = vld [vmem:[%s4833_s6 + $0x340] sm:$0xff]  ;;  %v475_v38 = vld [vmem:[%s4833_s6 + $0x2d0] sm:$0xff] }
  0x37   :  { %v122_v60 = vadd.f32 %v121_v63, %v3355_v40  ;;  %v3567_v31 = vmul.f32 %v3340_v26, %v3340_v26  ;;  %v77_v53 = vmax.f32 %v3317_v12, %v3338_v25  ;;  %2558 = vmatprep.subr.bf16.mxu0 %v2557_v20  ;;  %v2561_v62 = vpack.c.bf16 %v474_v51, %v473_v55  ;;  %v490_v37 = vld [vmem:[%s4833_s6 + $0x348] sm:$0xff]  ;;  %v3587_v16 = vld [vmem:[%s4833_s6 + $0x250] sm:$0xff]  ;;  %v3592_v48 = vld [vmem:[%s4833_s6 + $0x258] sm:$0xff] }
  0x38   :  { %108 = vmin.xlane.f32.xlu1 %v107_v56  ;;  %v149_v43 = vadd.f32 %v148_v0, %v134_v5  ;;  %v87_v44 = vmax.f32 %v76_v54, %v86_v1  ;;  %2588 = vmatpush3.bf16.msra.mxu1 %v2587_v4  ;;  %v2591_v12 = vpack.c.bf16 %v488_v58, %v487_v7  ;;  %v507_v50 = vld [vmem:[%s4833_s6 + $0x3d0] sm:$0xff]  ;;  %v508_v54 = vld [vmem:[%s4833_s6 + $0x3d8] sm:$0xff]  ;;  %v477_v58 = vld [vmem:[%s4833_s6 + $0x2e0] sm:$0xff] }
  0x39   :  { %v123_v39 = vadd.f32 %v122_v60, %v3391_v23  ;;  %v139_v5 = vmul.f32 %v3347_v36, %v3347_v36  ;;  %v3598_v1 = vmul.f32 %v3355_v40, %v3355_v40  ;;  %v3602_v49 = vmul.f32 %v3391_v23, %v3391_v23  ;;  %2590 = vmatprep.subr.bf16.mxu1 %v2589_v3  ;;  %v3613_v4 = vld [vmem:[%s4833_s6 + $0x350] sm:$0xff]  ;;  %v3624_v7 = vld [vmem:[%s4833_s6 + $0x358] sm:$0xff]  ;;  %v478_v60 = vld [vmem:[%s4833_s6 + $0x2e8] sm:$0xff] }
  0x3a   :  { %v2593_v63 = vpack.c.bf16 %v506_v21, %v505_v11  ;;  %v3618_v51 = vmul.f32 %v3413_v52, %v3413_v52  ;;  %v150_v56 = vadd.f32 %v149_v43, %v3500_v2  ;;  %2560 = vmatpush3.bf16.msra.mxu0 %v2559_v61  ;;  %v2563_v20 = vpack.c.bf16 %v458_v6, %v457_v59  ;;  %v3639_v61 = vld [vmem:[%s4833_s6 + $0x260] sm:$0xff]  ;;  %v3644_v3 = vld [vmem:[%s4833_s6 + $0x268] sm:$0xff] }
  0x3b   :  { %v124_v55 = vadd.f32 %v123_v39, %v3413_v52  ;;  %v78_v0 = vmax.f32 %v3319_v13, %v3394_v32  ;;  %v79_v2 = vmax.f32 %v3321_v14, %v3407_v45  ;;  %2562 = vmatprep.subr.bf16.mxu0 %v2561_v62  ;;  %v2565_v59 = vpack.c.bf16 %v476_v46, %v475_v38  ;;  %v509_v62 = vld [vmem:[%s4833_s6 + $0x3e0] sm:$0xff]  ;;  %v510_v38 = vld [vmem:[%s4833_s6 + $0x3e8] sm:$0xff]  ;;  %v563_v14 = vld [vmem:[%s4833_s6 + $0x590] sm:$0xff] }
  0x3c   :  { %v197_v6 = vsel %vm181_vm0, %v3227_v30, inf  ;;  %v151_v13 = vadd.f32 %v150_v56, %v3513_v8  ;;  %v88_v11 = vmax.f32 %v77_v53, %v87_v44  ;;  %2592 = vmatpush3.bf16.msra.mxu1 %v2591_v12  ;;  %v2595_v21 = vpack.c.bf16 %v490_v37, %v489_v33 }
  0x3d   :  { %125 = vadd.xlane.f32.xlu0 %v124_v55  ;;  %v361_v39 = vmax.f32 %v3338_v25, 0.0  ;;  %2594 = vmatprep.subr.bf16.mxu1 %v2593_v63  ;;  %v2567_v43 = vpack.c.bf16 %v3592_v48, %v3587_v16  ;;  %v2597_v46 = vpack.c.bf16 %v508_v54, %v507_v50  ;;  %v2599_v8 = vpack.c.bf16 %v3624_v7, %v3613_v4  ;;  %v493_v16 = vld [vmem:[%s4833_s6 + $0x360] sm:$0xff]  ;;  %v494_v54 = vld [vmem:[%s4833_s6 + $0x368] sm:$0xff]  ;;  %v479_v4 = vld [vmem:[%s4833_s6 + $0x2f0] sm:$0xff] }
  0x3e   :  { %v2569_v53 = vpack.c.bf16 %v478_v60, %v477_v58  ;;  %v152_v33 = vadd.f32 %v151_v13, %v3544_v57  ;;  %2564 = vmatpush3.bf16.msra.mxu0 %v2563_v20  ;;  %v2571_v37 = vpack.c.bf16 %v3644_v3, %v3639_v61  ;;  %v173_v44 = vmax.f32 %v3184_v9, %v3221_v27  ;;  %v480_v55 = vld [vmem:[%s4833_s6 + $0x2f8] sm:$0xff]  ;;  %v463_v60 = vld [vmem:[%s4833_s6 + $0x270] sm:$0xff] }
  0x3f   :  { %v189_v25 = vmin.f32 %v3184_v9, %v3221_v27  ;;  %2566 = vmatprep.subr.bf16.mxu0 %v2565_v59  ;;  %v2601_v12 = vpack.c.bf16 %v510_v38, %v509_v62  ;;  %v174_v48 = vmax.f32 %v3186_v10, %v3223_v28  ;;  %v190_v57 = vmin.f32 %v3186_v10, %v3223_v28 }
  0x40   :  { %v191_v63 = vmin.f32 %v3197_v15, %v3225_v29  ;;  %v153_v50 = vadd.f32 %v152_v33, %v3567_v31  ;;  %2596 = vmatpush3.bf16.msra.mxu1 %v2595_v21  ;;  %v192_v56 = vmin.f32 %v3208_v22, %v3238_v34  ;;  %v363_v31 = vmax.f32 %v3407_v45, 0.0  ;;  %v464_v21 = vld [vmem:[%s4833_s6 + $0x278] sm:$0xff]  ;;  %845 = vmatprep.mubr.f32.mxu0 %v361_v39 }
  0x41   :  { %v193_v20 = vmin.f32 %v189_v25, %v3240_v35  ;;  %2598 = vmatprep.subr.bf16.mxu1 %v2597_v46  ;;  %v175_v7 = vmax.f32 %v3197_v15, %v3225_v29  ;;  %v176_v58 = vmax.f32 %v3208_v22, %v3238_v34  ;;  %v194_v59 = vmin.f32 %v190_v57, %v3252_v41  ;;  %v511_v46 = vld [vmem:[%s4833_s6 + $0x3f0] sm:$0xff]  ;;  %v512_v33 = vld [vmem:[%s4833_s6 + $0x3f8] sm:$0xff] }
  0x42   :  { %v195_v61 = vmin.f32 %v191_v63, %v3254_v42  ;;  %v154_v3 = vadd.f32 %v153_v50, %v139_v5  ;;  %2568 = vmatpush3.bf16.msra.mxu0 %v2567_v43  ;;  %v177_v13 = vmax.f32 %v173_v44, %v3240_v35  ;;  %v196_v62 = vmin.f32 %v192_v56, %v3266_v47  ;;  %v529_v50 = vld [vmem:[%s4833_s6 + $0x480] sm:$0xff]  ;;  %v562_v56 = vld [vmem:[%s4833_s6 + $0x588] sm:$0xff] }
  0x43   :  { %v198_v38 = vmin.f32 %v193_v20, %v197_v6  ;;  %v89_v25 = vmax.f32 %v78_v0, %v88_v11  ;;  %2570 = vmatprep.subr.bf16.mxu0 %v2569_v53  ;;  %v2603_v5 = vpack.c.bf16 %v494_v54, %v493_v16  ;;  %v182_v43 = vsel %vm181_vm0, %v3227_v30, -inf  ;;  %v530_v0 = vld [vmem:[%s4833_s6 + $0x488] sm:$0xff]  ;;  %915 = vmatprep.mubr.f32.mxu1 %v363_v31  ;;  %v513_v31 = vld [vmem:[%s4833_s6 + $0x400] sm:$0xff] }
  0x44   :  { %v2573_v44 = vpack.c.bf16 %v480_v55, %v479_v4  ;;  %v155_v57 = vadd.f32 %v154_v3, %v3598_v1  ;;  %2600 = vmatpush3.bf16.msra.mxu1 %v2599_v8  ;;  %v200_v63 = vmin.f32 %v195_v61, %v196_v62  ;;  %v178_v11 = vmax.f32 %v174_v48, %v3252_v41  ;;  %v495_v1 = vld [vmem:[%s4833_s6 + $0x370] sm:$0xff]  ;;  %v496_v8 = vld [vmem:[%s4833_s6 + $0x378] sm:$0xff]  ;;  %v561_v48 = vld [vmem:[%s4833_s6 + $0x580] sm:$0xff] }
  0x45   :  { %v199_v6 = vmin.f32 %v198_v38, %v194_v59  ;;  %2602 = vmatprep.subr.bf16.mxu1 %v2601_v12  ;;  %v179_v53 = vmax.f32 %v175_v7, %v3254_v42  ;;  %v2575_v39 = vpack.c.bf16 %v464_v21, %v463_v60  ;;  %v2605_v16 = vpack.c.bf16 %v512_v33, %v511_v46  ;;  %v532_v60 = vld [vmem:[%s4833_s6 + $0x498] sm:$0xff]  ;;  %v515_v46 = vld [vmem:[%s4833_s6 + $0x410] sm:$0xff] }
  0x46   :  { %v156_v54 = vadd.f32 %v155_v57, %v3602_v49  ;;  %2572 = vmatpush3.bf16.msra.mxu0 %v2571_v37  ;;  %v180_v4 = vmax.f32 %v176_v58, %v3266_v47  ;;  %v183_v12 = vmax.f32 %v177_v13, %v182_v43  ;;  %v2609_v20 = vpack.c.bf16 %v530_v0, %v529_v50  ;;  %v514_v49 = vld [vmem:[%s4833_s6 + $0x408] sm:$0xff]  ;;  %v531_v58 = vld [vmem:[%s4833_s6 + $0x490] sm:$0xff]  ;;  %v516_v33 = vld [vmem:[%s4833_s6 + $0x418] sm:$0xff] }
  0x47   :  { %v201_v55 = vmin.f32 %v199_v6, %v200_v63  ;;  %2574 = vmatprep.subr.bf16.mxu0 %v2573_v44  ;;  %v2607_v7 = vpack.c.bf16 %v496_v8, %v495_v1  ;;  %v90_v59 = vmax.f32 %v79_v2, %v89_v25  ;;  %v360_v61 = vmax.f32 %v3336_v24, 0.0  ;;  %v546_v13 = vld [vmem:[%s4833_s6 + $0x508] sm:$0xff]  ;;  %v564_v24 = vld [vmem:[%s4833_s6 + $0x598] sm:$0xff]  ;;  %v547_v57 = vld [vmem:[%s4833_s6 + $0x510] sm:$0xff] }
  0x48   :  { %v157_v37 = vadd.f32 %v156_v54, %v3618_v51  ;;  %2604 = vmatpush3.bf16.msra.mxu1 %v2603_v5  ;;  %v2641_v3 = vpack.c.bf16 %v562_v56, %v561_v48  ;;  %v545_v51 = vld [vmem:[%s4833_s6 + $0x500] sm:$0xff]  ;;  %v184_v21 = vmax.f32 %v183_v12, %v178_v11  ;;  %v185_v62 = vmax.f32 %v179_v53, %v180_v4  ;;  %v534_v43 = vld [vmem:[%s4833_s6 + $0x4a8] sm:$0xff]  ;;  %v548_v6 = vld [vmem:[%s4833_s6 + $0x518] sm:$0xff] }
  0x49   :  { %202 = vmin.xlane.f32.xlu1 %v201_v55  ;;  %2606 = vmatprep.subr.bf16.mxu1 %v2605_v16  ;;  %v2611_v38 = vpack.c.bf16 %v514_v49, %v513_v31  ;;  %v362_v45 = vmax.f32 %v3394_v32, 0.0  ;;  %v2613_v2 = vpack.c.bf16 %v532_v60, %v531_v58  ;;  %v2643_v25 = vpack.c.bf16 %v546_v13, %v545_v51  ;;  %v533_v5 = vld [vmem:[%s4833_s6 + $0x4a0] sm:$0xff]  ;;  %v566_v11 = vld [vmem:[%s4833_s6 + $0x5a8] sm:$0xff]  ;;  %v535_v1 = vld [vmem:[%s4833_s6 + $0x4b0] sm:$0xff] }
  0x4a   :  { %158 = vadd.xlane.f32.xlu0 %v157_v37  ;;  %2576 = vmatpush3.bf16.msra.mxu0 %v2575_v39  ;;  %v365_v32 = vmax.f32 %v3326_v18, 0.0  ;;  %v2645_v44 = vpack.c.bf16 %v564_v24, %v563_v14  ;;  %v367_v63 = vmax.f32 %v3340_v26, 0.0  ;;  %v186_v50 = vmax.f32 %v184_v21, %v185_v62  ;;  %v565_v18 = vld [vmem:[%s4833_s6 + $0x5a0] sm:$0xff]  ;;  %v518_v26 = vld [vmem:[%s4833_s6 + $0x428] sm:$0xff]  ;;  %v536_v8 = vld [vmem:[%s4833_s6 + $0x4b8] sm:$0xff] }
  0x4b   :  { %2610 = vmatprep.subr.bf16.mxu0 %v2609_v20  ;;  %v2615_v0 = vpack.c.bf16 %v516_v33, %v515_v46  ;;  %v2617_v53 = vpack.c.bf16 %v534_v43, %v533_v5  ;;  %v517_v39 = vld [vmem:[%s4833_s6 + $0x420] sm:$0xff]  ;;  %v2647_v16 = vpack.c.bf16 %v548_v6, %v547_v57  ;;  %v2649_v54 = vpack.c.bf16 %v566_v11, %v565_v18  ;;  %v550_v12 = vld [vmem:[%s4833_s6 + $0x528] sm:$0xff]  ;;  %v567_v48 = vld [vmem:[%s4833_s6 + $0x5b0] sm:$0xff] }
  0x4c   :  { %2608 = vmatpush3.bf16.msra.mxu1 %v2607_v7  ;;  %v549_v4 = vld [vmem:[%s4833_s6 + $0x520] sm:$0xff]  ;;  %v2619_v55 = vpack.c.bf16 %v518_v26, %v517_v39  ;;  %v568_v56 = vld [vmem:[%s4833_s6 + $0x5b8] sm:$0xff]  ;;  %v2621_v20 = vpack.c.bf16 %v536_v8, %v535_v1  ;;  %v519_v31 = vld [vmem:[%s4833_s6 + $0x430] sm:$0xff] }
  0x4d   :  { %846 = vmatmul.mubr.f32.vlgmr.msra.gmra.mrb[2].mxu0 %v360_v61  ;;  %2642 = vmatprep.subr.bf16.mxu1 %v2641_v3  ;;  %v520_v49 = vld [vmem:[%s4833_s6 + $0x438] sm:$0xff]  ;;  %v2651_v37 = vpack.c.bf16 %v550_v12, %v549_v4  ;;  %v537_v7 = vld [vmem:[%s4833_s6 + $0x4c0] sm:$0xff]  ;;  %v538_v58 = vld [vmem:[%s4833_s6 + $0x4c8] sm:$0xff]  ;;  %v2653_v60 = vpack.c.bf16 %v568_v56, %v567_v48 }
  0x4e   :  { %91 = vmax.xlane.f32.xlu0 %v90_v59  ;;  %2612 = vmatpush3.bf16.msra.mxu0 %v2611_v38  ;;  %v551_v59 = vld [vmem:[%s4833_s6 + $0x530] sm:$0xff]  ;;  %v552_v61 = vld [vmem:[%s4833_s6 + $0x538] sm:$0xff]  ;;  %v2623_v3 = vpack.c.bf16 %v520_v49, %v519_v31  ;;  %v569_v51 = vld [vmem:[%s4833_s6 + $0x5c0] sm:$0xff]  ;;  %v2625_v21 = vpack.c.bf16 %v538_v58, %v537_v7 }
  0x4f   :  { %916 = vmatmul.mubr.f32.vlgmr.msra.gmra.mrb[2].mxu1 %v362_v45  ;;  %2614 = vmatprep.subr.bf16.mxu0 %v2613_v2  ;;  %v570_v13 = vld [vmem:[%s4833_s6 + $0x5c8] sm:$0xff]  ;;  %v521_v62 = vld [vmem:[%s4833_s6 + $0x440] sm:$0xff]  ;;  %v2655_v14 = vpack.c.bf16 %v552_v61, %v551_v59  ;;  %v539_v24 = vld [vmem:[%s4833_s6 + $0x4d0] sm:$0xff] }
  0x50   :  { %2644 = vmatpush3.bf16.msra.mxu1 %v2643_v25  ;;  %985 = vmatprep.mubr.f32.mxu0 %v365_v32  ;;  %v522_v38 = vld [vmem:[%s4833_s6 + $0x448] sm:$0xff]  ;;  %v540_v45 = vld [vmem:[%s4833_s6 + $0x4d8] sm:$0xff]  ;;  %v2657_v2 = vpack.c.bf16 %v570_v13, %v569_v51  ;;  %v553_v46 = vld [vmem:[%s4833_s6 + $0x540] sm:$0xff] }
  0x51   :  { %2646 = vmatprep.subr.bf16.mxu1 %v2645_v44  ;;  %1055 = vmatprep.mubr.f32.mxu1 %v367_v63  ;;  %v554_v33 = vld [vmem:[%s4833_s6 + $0x548] sm:$0xff]  ;;  %v2627_v25 = vpack.c.bf16 %v522_v38, %v521_v62  ;;  %v571_v5 = vld [vmem:[%s4833_s6 + $0x5d0] sm:$0xff]  ;;  %v572_v43 = vld [vmem:[%s4833_s6 + $0x5d8] sm:$0xff]  ;;  %v2629_v32 = vpack.c.bf16 %v540_v45, %v539_v24 }
  0x52   :  { %187 = vmax.xlane.f32.xlu0 %v186_v50  ;;  %2616 = vmatpush3.bf16.msra.mxu0 %v2615_v0  ;;  %v523_v44 = vld [vmem:[%s4833_s6 + $0x450] sm:$0xff]  ;;  %v524_v57 = vld [vmem:[%s4833_s6 + $0x458] sm:$0xff]  ;;  %v2659_v6 = vpack.c.bf16 %v554_v33, %v553_v46  ;;  %v541_v63 = vld [vmem:[%s4833_s6 + $0x4e0] sm:$0xff]  ;;  %v2661_v0 = vpack.c.bf16 %v572_v43, %v571_v5 }
  0x53   :  { %2618 = vmatprep.subr.bf16.mxu0 %v2617_v53  ;;  %v542_v50 = vld [vmem:[%s4833_s6 + $0x4e8] sm:$0xff]  ;;  %v555_v18 = vld [vmem:[%s4833_s6 + $0x550] sm:$0xff]  ;;  %v556_v11 = vld [vmem:[%s4833_s6 + $0x558] sm:$0xff]  ;;  %v2631_v53 = vpack.c.bf16 %v524_v57, %v523_v44 }
  0x54   :  { %2648 = vmatpush3.bf16.msra.mxu1 %v2647_v16  ;;  %v573_v39 = vld [vmem:[%s4833_s6 + $0x5e0] sm:$0xff]  ;;  %v574_v26 = vld [vmem:[%s4833_s6 + $0x5e8] sm:$0xff]  ;;  %v2633_v16 = vpack.c.bf16 %v542_v50, %v541_v63  ;;  %v543_v4 = vld [vmem:[%s4833_s6 + $0x4f0] sm:$0xff]  ;;  %v366_v63 = vmax.f32 %v3328_v19, 0.0  ;;  %v371_v19 = vmax.f32 %v3413_v52, 0.0 }
  0x55   :  { %2650 = vmatprep.subr.bf16.mxu1 %v2649_v54  ;;  %v525_v1 = vld [vmem:[%s4833_s6 + $0x460] sm:$0xff]  ;;  %v526_v8 = vld [vmem:[%s4833_s6 + $0x468] sm:$0xff]  ;;  %v2663_v54 = vpack.c.bf16 %v556_v11, %v555_v18  ;;  %v544_v12 = vld [vmem:[%s4833_s6 + $0x4f8] sm:$0xff] }
  0x56   :  { %2620 = vmatpush3.bf16.msra.mxu0 %v2619_v55  ;;  %v2665_v55 = vpack.c.bf16 %v574_v26, %v573_v39  ;;  %v557_v48 = vld [vmem:[%s4833_s6 + $0x560] sm:$0xff]  ;;  %v558_v56 = vld [vmem:[%s4833_s6 + $0x568] sm:$0xff]  ;;  %v575_v31 = vld [vmem:[%s4833_s6 + $0x5f0] sm:$0xff] }
  0x57   :  { %2622 = vmatprep.subr.bf16.mxu0 %v2621_v20  ;;  %v2635_v20 = vpack.c.bf16 %v526_v8, %v525_v1  ;;  %v576_v49 = vld [vmem:[%s4833_s6 + $0x5f8] sm:$0xff]  ;;  %v527_v7 = vld [vmem:[%s4833_s6 + $0x470] sm:$0xff]  ;;  %v593_v59 = vld [vmem:[%s4833_s6 + $0x680] sm:$0xff] }
  0x58   :  { %2652 = vmatpush3.bf16.msra.mxu1 %v2651_v37  ;;  %v2637_v37 = vpack.c.bf16 %v544_v12, %v543_v4  ;;  %v528_v58 = vld [vmem:[%s4833_s6 + $0x478] sm:$0xff]  ;;  %v594_v61 = vld [vmem:[%s4833_s6 + $0x688] sm:$0xff]  ;;  %v559_v51 = vld [vmem:[%s4833_s6 + $0x570] sm:$0xff] }
  0x59   :  { %2654 = vmatprep.subr.bf16.mxu1 %v2653_v60  ;;  %v2667_v60 = vpack.c.bf16 %v558_v56, %v557_v48  ;;  %v560_v13 = vld [vmem:[%s4833_s6 + $0x578] sm:$0xff]  ;;  %v625_v62 = vld [vmem:[%s4833_s6 + $0x780] sm:$0xff]  ;;  %v626_v38 = vld [vmem:[%s4833_s6 + $0x788] sm:$0xff] }
  0x5a   :  { %2624 = vmatpush3.bf16.msra.mxu0 %v2623_v3  ;;  %v2669_v3 = vpack.c.bf16 %v576_v49, %v575_v31  ;;  %v577_v24 = vld [vmem:[%s4833_s6 + $0x600] sm:$0xff]  ;;  %v578_v45 = vld [vmem:[%s4833_s6 + $0x608] sm:$0xff]  ;;  %v595_v46 = vld [vmem:[%s4833_s6 + $0x690] sm:$0xff]  ;;  %v2705_v5 = vpack.c.bf16 %v626_v38, %v625_v62 }
  0x5b   :  { %2626 = vmatprep.subr.bf16.mxu0 %v2625_v21  ;;  %v2639_v21 = vpack.c.bf16 %v528_v58, %v527_v7  ;;  %v596_v33 = vld [vmem:[%s4833_s6 + $0x698] sm:$0xff]  ;;  %v609_v43 = vld [vmem:[%s4833_s6 + $0x700] sm:$0xff]  ;;  %v2675_v44 = vpack.c.bf16 %v578_v45, %v577_v24  ;;  %v627_v57 = vld [vmem:[%s4833_s6 + $0x790] sm:$0xff] }
  0x5c   :  { %2656 = vmatpush3.bf16.msra.mxu1 %v2655_v14  ;;  %v2673_v14 = vpack.c.bf16 %v594_v61, %v593_v59  ;;  %v2677_v50 = vpack.c.bf16 %v596_v33, %v595_v46  ;;  %v580_v18 = vld [vmem:[%s4833_s6 + $0x618] sm:$0xff]  ;;  %v611_v26 = vld [vmem:[%s4833_s6 + $0x710] sm:$0xff]  ;;  %v629_v8 = vld [vmem:[%s4833_s6 + $0x7a0] sm:$0xff] }
  0x5d   :  { %2658 = vmatprep.subr.bf16.mxu1 %v2657_v2  ;;  %v2671_v2 = vpack.c.bf16 %v560_v13, %v559_v51  ;;  %v630_v52 = vld [vmem:[%s4833_s6 + $0x7a8] sm:$0xff]  ;;  %v581_v4 = vld [vmem:[%s4833_s6 + $0x620] sm:$0xff]  ;;  %v599_v48 = vld [vmem:[%s4833_s6 + $0x6b0] sm:$0xff] }
  0x5e   :  { %2628 = vmatpush3.bf16.msra.mxu0 %v2627_v25  ;;  %v364_v25 = vmax.f32 %v3324_v17, 0.0  ;;  %v369_v17 = vmax.f32 %v3355_v40, 0.0  ;;  %v598_v40 = vld [vmem:[%s4833_s6 + $0x6a8] sm:$0xff]  ;;  %v600_v56 = vld [vmem:[%s4833_s6 + $0x6b8] sm:$0xff]  ;;  %v613_v31 = vld [vmem:[%s4833_s6 + $0x720] sm:$0xff] }
  0x5f   :  { %2630 = vmatprep.subr.bf16.mxu0 %v2629_v32  ;;  %v610_v32 = vld [vmem:[%s4833_s6 + $0x708] sm:$0xff]  ;;  %v631_v7 = vld [vmem:[%s4833_s6 + $0x7b0] sm:$0xff]  ;;  %v632_v58 = vld [vmem:[%s4833_s6 + $0x7b8] sm:$0xff] }
  0x60   :  { %2660 = vmatpush3.bf16.msra.mxu1 %v2659_v6  ;;  %v628_v6 = vld [vmem:[%s4833_s6 + $0x798] sm:$0xff]  ;;  %v2707_v11 = vpack.c.bf16 %v610_v32, %v609_v43  ;;  %v582_v12 = vld [vmem:[%s4833_s6 + $0x628] sm:$0xff]  ;;  %v583_v59 = vld [vmem:[%s4833_s6 + $0x630] sm:$0xff] }
  0x61   :  { %2662 = vmatprep.subr.bf16.mxu1 %v2661_v0  ;;  %v579_v0 = vld [vmem:[%s4833_s6 + $0x610] sm:$0xff]  ;;  %v2709_v39 = vpack.c.bf16 %v628_v6, %v627_v57  ;;  %v614_v49 = vld [vmem:[%s4833_s6 + $0x728] sm:$0xff]  ;;  %v584_v61 = vld [vmem:[%s4833_s6 + $0x638] sm:$0xff] }
  0x62   :  { %2632 = vmatpush3.bf16.msra.mxu0 %v2631_v53  ;;  %v597_v53 = vld [vmem:[%s4833_s6 + $0x6a0] sm:$0xff]  ;;  %v2679_v1 = vpack.c.bf16 %v580_v18, %v579_v0  ;;  %v602_v13 = vld [vmem:[%s4833_s6 + $0x6c8] sm:$0xff]  ;;  %v615_v62 = vld [vmem:[%s4833_s6 + $0x730] sm:$0xff] }
  0x63   :  { %2634 = vmatprep.subr.bf16.mxu0 %v2633_v16  ;;  %v612_v16 = vld [vmem:[%s4833_s6 + $0x718] sm:$0xff]  ;;  %v601_v51 = vld [vmem:[%s4833_s6 + $0x6c0] sm:$0xff]  ;;  %v634_v45 = vld [vmem:[%s4833_s6 + $0x7c8] sm:$0xff] }
  0x64   :  { %2664 = vmatpush3.bf16.msra.mxu1 %v2663_v54  ;;  %v2681_v54 = vpack.c.bf16 %v598_v40, %v597_v53  ;;  %v616_v38 = vld [vmem:[%s4833_s6 + $0x738] sm:$0xff]  ;;  %v633_v24 = vld [vmem:[%s4833_s6 + $0x7c0] sm:$0xff]  ;;  %v586_v33 = vld [vmem:[%s4833_s6 + $0x648] sm:$0xff] }
  0x65   :  { %2666 = vmatprep.subr.bf16.mxu1 %v2665_v55  ;;  %v2711_v55 = vpack.c.bf16 %v612_v16, %v611_v26  ;;  %v585_v46 = vld [vmem:[%s4833_s6 + $0x640] sm:$0xff]  ;;  %v604_v43 = vld [vmem:[%s4833_s6 + $0x6d8] sm:$0xff]  ;;  %v2721_v32 = vpack.c.bf16 %v634_v45, %v633_v24  ;;  %v618_v57 = vld [vmem:[%s4833_s6 + $0x748] sm:$0xff] }
  0x66   :  { %2636 = vmatpush3.bf16.msra.mxu0 %v2635_v20  ;;  %v2713_v20 = vpack.c.bf16 %v630_v52, %v629_v8  ;;  %v2691_v6 = vpack.c.bf16 %v586_v33, %v585_v46  ;;  %v587_v0 = vld [vmem:[%s4833_s6 + $0x650] sm:$0xff]  ;;  %v588_v18 = vld [vmem:[%s4833_s6 + $0x658] sm:$0xff]  ;;  %v605_v53 = vld [vmem:[%s4833_s6 + $0x6e0] sm:$0xff] }
  0x67   :  { %2638 = vmatprep.subr.bf16.mxu0 %v2637_v37  ;;  %v2683_v37 = vpack.c.bf16 %v582_v12, %v581_v4  ;;  %v606_v40 = vld [vmem:[%s4833_s6 + $0x6e8] sm:$0xff]  ;;  %v620_v26 = vld [vmem:[%s4833_s6 + $0x758] sm:$0xff]  ;;  %v2695_v16 = vpack.c.bf16 %v588_v18, %v587_v0  ;;  %v1203_v18 = vld [vmem:[%s4836_s7 + $0x10] sm:$0xff] }
  0x68   :  { %2668 = vmatpush3.bf16.msra.mxu1 %v2667_v60  ;;  %v2685_v60 = vpack.c.bf16 %v600_v56, %v599_v48  ;;  %v638_v8 = vld [vmem:[%s4833_s6 + $0x7e8] sm:$0xff]  ;;  %v2697_v52 = vpack.c.bf16 %v606_v40, %v605_v53  ;;  %v608_v48 = vld [vmem:[%s4833_s6 + $0x6f8] sm:$0xff]  ;;  %v1221_v40 = vld [vmem:[%s4836_s7 + $0xa0] sm:$0xff] }
  0x69   :  { %2670 = vmatprep.subr.bf16.mxu1 %v2669_v3  ;;  %v2715_v3 = vpack.c.bf16 %v614_v49, %v613_v31  ;;  %v590_v4 = vld [vmem:[%s4833_s6 + $0x668] sm:$0xff] }
  0x6a   :  { %2640 = vmatpush3.bf16.msra.mxu0 %v2639_v21  ;;  %v2717_v21 = vpack.c.bf16 %v632_v58, %v631_v7  ;;  %v622_v31 = vld [vmem:[%s4833_s6 + $0x768] sm:$0xff]  ;;  %v640_v7 = vld [vmem:[%s4833_s6 + $0x7f8] sm:$0xff] }
  0x6b   :  { %2674 = vmatprep.subr.bf16.mxu0 %v2673_v14  ;;  %v2687_v14 = vpack.c.bf16 %v584_v61, %v583_v59  ;;  %v592_v59 = vld [vmem:[%s4833_s6 + $0x678] sm:$0xff]  ;;  %v1250_v24 = vld [vmem:[%s4836_s7 + $0x188] sm:$0xff] }
  0x6c   :  { %2672 = vmatpush3.bf16.msra.mxu1 %v2671_v2  ;;  %v2689_v2 = vpack.c.bf16 %v602_v13, %v601_v51  ;;  %v1218_v51 = vld [vmem:[%s4836_s7 + $0x88] sm:$0xff] }
  0x6d   :  { %986 = vmatmul.mubr.f32.vlgmr.msra.gmra.mrb[4].mxu0 %v364_v25  ;;  %2706 = vmatprep.subr.bf16.mxu1 %v2705_v5  ;;  %v2719_v25 = vpack.c.bf16 %v616_v38, %v615_v62  ;;  %v603_v5 = vld [vmem:[%s4833_s6 + $0x6d0] sm:$0xff]  ;;  %v624_v62 = vld [vmem:[%s4833_s6 + $0x778] sm:$0xff]  ;;  %v1202_v46 = vld [vmem:[%s4836_s7 + $0x8] sm:$0xff] }
  0x6e   :  { %2676 = vmatpush3.bf16.msra.mxu0 %v2675_v44  ;;  %1125 = vmatprep.mubr.f32.mxu0 %v369_v17  ;;  %v617_v44 = vld [vmem:[%s4833_s6 + $0x740] sm:$0xff]  ;;  %v635_v17 = vld [vmem:[%s4833_s6 + $0x7d0] sm:$0xff] }
  0x6f   :  { %1056 = vmatmul.mubr.f32.vlgmr.msra.gmra.mrb[4].mxu1 %v366_v63  ;;  %2678 = vmatprep.subr.bf16.mxu0 %v2677_v50  ;;  %v636_v63 = vld [vmem:[%s4833_s6 + $0x7d8] sm:$0xff]  ;;  %v2693_v50 = vpack.c.bf16 %v604_v43, %v603_v5  ;;  %v368_v43 = vmax.f32 %v3347_v36, 0.0  ;;  %v373_v36 = vmax.f32 %v3186_v10, 0.0  ;;  %v1222_v10 = vld [vmem:[%s4836_s7 + $0xa8] sm:$0xff] }
  0x70   :  { %2708 = vmatpush3.bf16.msra.mxu1 %v2707_v11  ;;  %1195 = vmatprep.mubr.f32.mxu1 %v371_v19  ;;  %v2723_v11 = vpack.c.bf16 %v618_v57, %v617_v44  ;;  %v2725_v19 = vpack.c.bf16 %v636_v63, %v635_v17  ;;  %v1220_v5 = vld [vmem:[%s4836_s7 + $0x98] sm:$0xff]  ;;  %v1233_v44 = vld [vmem:[%s4836_s7 + $0x100] sm:$0xff]  ;;  %v1234_v57 = vld [vmem:[%s4836_s7 + $0x108] sm:$0xff] }
  0x71   :  { %2710 = vmatprep.subr.bf16.mxu1 %v2709_v39  ;;  %v619_v39 = vld [vmem:[%s4833_s6 + $0x750] sm:$0xff]  ;;  %v1252_v63 = vld [vmem:[%s4836_s7 + $0x198] sm:$0xff]  ;;  %v2771_v53 = vpack.c.bf16 %v1234_v57, %v1233_v44 }
  0x72   :  { %2680 = vmatpush3.bf16.msra.mxu0 %v2679_v1  ;;  %v637_v1 = vld [vmem:[%s4833_s6 + $0x7e0] sm:$0xff]  ;;  %v2727_v12 = vpack.c.bf16 %v620_v26, %v619_v39  ;;  %v1251_v17 = vld [vmem:[%s4836_s7 + $0x190] sm:$0xff]  ;;  %v1236_v26 = vld [vmem:[%s4836_s7 + $0x118] sm:$0xff] }
  0x73   :  { %2682 = vmatprep.subr.bf16.mxu0 %v2681_v54  ;;  %v589_v54 = vld [vmem:[%s4833_s6 + $0x660] sm:$0xff]  ;;  %v2729_v56 = vpack.c.bf16 %v638_v8, %v637_v1  ;;  %v1235_v39 = vld [vmem:[%s4836_s7 + $0x110] sm:$0xff]  ;;  %v2745_v8 = vpack.c.bf16 %v1222_v10, %v1221_v40  ;;  %v1244_v40 = vld [vmem:[%s4836_s7 + $0x158] sm:$0xff] }
  0x74   :  { %2712 = vmatpush3.bf16.msra.mxu1 %v2711_v55  ;;  %v607_v55 = vld [vmem:[%s4833_s6 + $0x6f0] sm:$0xff]  ;;  %v2699_v49 = vpack.c.bf16 %v590_v4, %v589_v54  ;;  %v1253_v1 = vld [vmem:[%s4836_s7 + $0x1a0] sm:$0xff]  ;;  %v1206_v54 = vld [vmem:[%s4836_s7 + $0x28] sm:$0xff]  ;;  %v2775_v4 = vpack.c.bf16 %v1236_v26, %v1235_v39 }
  0x75   :  { %2714 = vmatprep.subr.bf16.mxu1 %v2713_v20  ;;  %v621_v20 = vld [vmem:[%s4833_s6 + $0x760] sm:$0xff]  ;;  %v2701_v58 = vpack.c.bf16 %v608_v48, %v607_v55  ;;  %v1224_v55 = vld [vmem:[%s4836_s7 + $0xb8] sm:$0xff]  ;;  %v1259_v57 = vld [vmem:[%s4836_s7 + $0x1d0] sm:$0xff] }
  0x76   :  { %2684 = vmatpush3.bf16.msra.mxu0 %v2683_v37  ;;  %v639_v37 = vld [vmem:[%s4833_s6 + $0x7f0] sm:$0xff]  ;;  %v2731_v61 = vpack.c.bf16 %v622_v31, %v621_v20  ;;  %v1238_v20 = vld [vmem:[%s4836_s7 + $0x128] sm:$0xff]  ;;  %v1213_v26 = vld [vmem:[%s4836_s7 + $0x60] sm:$0xff] }
  0x77   :  { %2686 = vmatprep.subr.bf16.mxu0 %v2685_v60  ;;  %v591_v60 = vld [vmem:[%s4833_s6 + $0x670] sm:$0xff]  ;;  %v2733_v13 = vpack.c.bf16 %v640_v7, %v639_v37  ;;  %v1256_v37 = vld [vmem:[%s4836_s7 + $0x1b8] sm:$0xff] }
  0x78   :  { %2716 = vmatpush3.bf16.msra.mxu1 %v2715_v3  ;;  %v1217_v3 = vld [vmem:[%s4836_s7 + $0x80] sm:$0xff]  ;;  %v2703_v38 = vpack.c.bf16 %v592_v59, %v591_v60  ;;  %v1208_v60 = vld [vmem:[%s4836_s7 + $0x38] sm:$0xff] }
  0x79   :  { %2718 = vmatprep.subr.bf16.mxu1 %v2717_v21  ;;  %v623_v21 = vld [vmem:[%s4833_s6 + $0x770] sm:$0xff]  ;;  %v2737_v45 = vpack.c.bf16 %v1218_v51, %v1217_v3  ;;  %v1226_v3 = vld [vmem:[%s4836_s7 + $0xc8] sm:$0xff] }
  0x7a   :  { %2688 = vmatpush3.bf16.msra.mxu0 %v2687_v14  ;;  %v1249_v14 = vld [vmem:[%s4836_s7 + $0x180] sm:$0xff]  ;;  %v2735_v33 = vpack.c.bf16 %v624_v62, %v623_v21  ;;  %v1240_v21 = vld [vmem:[%s4836_s7 + $0x138] sm:$0xff] }
  0x7b   :  { %2690 = vmatprep.subr.bf16.mxu0 %v2689_v2  ;;  %v1201_v2 = vld [vmem:[%s4836_s7] sm:$0xff] }
  0x7c   :  { %2720 = vmatpush3.bf16.msra.mxu1 %v2719_v25  ;;  %v1219_v25 = vld [vmem:[%s4836_s7 + $0x90] sm:$0xff] }
  0x7d   :  { %2722 = vmatprep.subr.bf16.mxu1 %v2721_v32  ;;  %v2769_v32 = vpack.c.bf16 %v1250_v24, %v1249_v14  ;;  %v2741_v0 = vpack.c.bf16 %v1220_v5, %v1219_v25  ;;  %v1258_v14 = vld [vmem:[%s4836_s7 + $0x1c8] sm:$0xff]  ;;  %v1228_v25 = vld [vmem:[%s4836_s7 + $0xd8] sm:$0xff] }
  0x7e   :  { %2692 = vmatpush3.bf16.msra.mxu0 %v2691_v6  ;;  %v2739_v6 = vpack.c.bf16 %v1202_v46, %v1201_v2  ;;  %v1210_v2 = vld [vmem:[%s4836_s7 + $0x48] sm:$0xff] }
  0x7f   :  { %2694 = vmatprep.subr.bf16.mxu0 %v2693_v50  ;;  %v370_v50 = vmax.f32 %v3391_v23, 0.0  ;;  %v375_v23 = vmax.f32 %v3208_v22, 0.0  ;;  %v1254_v22 = vld [vmem:[%s4836_s7 + $0x1a8] sm:$0xff] }
  0x80   :  { %2724 = vmatpush3.bf16.msra.mxu1 %v2723_v11  ;;  %v1204_v11 = vld [vmem:[%s4836_s7 + $0x18] sm:$0xff]  ;;  %v2777_v48 = vpack.c.bf16 %v1254_v22, %v1253_v1  ;;  %v1231_v22 = vld [vmem:[%s4836_s7 + $0xf0] sm:$0xff] }
  0x81   :  { %2726 = vmatprep.subr.bf16.mxu1 %v2725_v19  ;;  %v2773_v19 = vpack.c.bf16 %v1252_v63, %v1251_v17  ;;  %v1211_v63 = vld [vmem:[%s4836_s7 + $0x50] sm:$0xff] }
  0x82   :  { %2696 = vmatpush3.bf16.msra.mxu0 %v2695_v16  ;;  %v2743_v16 = vpack.c.bf16 %v1204_v11, %v1203_v18  ;;  %v1230_v18 = vld [vmem:[%s4836_s7 + $0xe8] sm:$0xff] }
  0x83   :  { %2698 = vmatprep.subr.bf16.mxu0 %v2697_v52  ;;  %v1205_v52 = vld [vmem:[%s4836_s7 + $0x20] sm:$0xff] }
  0x84   :  { %2728 = vmatpush3.bf16.msra.mxu1 %v2727_v12  ;;  %v1223_v12 = vld [vmem:[%s4836_s7 + $0xb0] sm:$0xff]  ;;  %v2747_v31 = vpack.c.bf16 %v1206_v54, %v1205_v52  ;;  %v1245_v54 = vld [vmem:[%s4836_s7 + $0x160] sm:$0xff] }
  0x85   :  { %2730 = vmatprep.subr.bf16.mxu1 %v2729_v56  ;;  %v1237_v56 = vld [vmem:[%s4836_s7 + $0x120] sm:$0xff]  ;;  %v2749_v7 = vpack.c.bf16 %v1224_v55, %v1223_v12  ;;  %v1263_v55 = vld [vmem:[%s4836_s7 + $0x1f0] sm:$0xff] }
  0x86   :  { %2700 = vmatpush3.bf16.msra.mxu0 %v2699_v49  ;;  %v1255_v49 = vld [vmem:[%s4836_s7 + $0x1b0] sm:$0xff]  ;;  %v2779_v59 = vpack.c.bf16 %v1238_v20, %v1237_v56 }
  0x87   :  { %2702 = vmatprep.subr.bf16.mxu0 %v2701_v58  ;;  %v1207_v58 = vld [vmem:[%s4836_s7 + $0x30] sm:$0xff]  ;;  %v2781_v51 = vpack.c.bf16 %v1256_v37, %v1255_v49  ;;  %v1281_v37 = vld [vmem:[%s4836_s7 + $0x280] sm:$0xff] }
  0x88   :  { %2732 = vmatpush3.bf16.msra.mxu1 %v2731_v61  ;;  %v1225_v61 = vld [vmem:[%s4836_s7 + $0xc0] sm:$0xff]  ;;  %v2751_v62 = vpack.c.bf16 %v1208_v60, %v1207_v58  ;;  %v1215_v20 = vld [vmem:[%s4836_s7 + $0x70] sm:$0xff] }
  0x89   :  { %2734 = vmatprep.subr.bf16.mxu1 %v2733_v13  ;;  %v1239_v13 = vld [vmem:[%s4836_s7 + $0x130] sm:$0xff]  ;;  %v2753_v24 = vpack.c.bf16 %v1226_v3, %v1225_v61  ;;  %v1313_v3 = vld [vmem:[%s4836_s7 + $0x380] sm:$0xff] }
  0x8a   :  { %2704 = vmatpush3.bf16.msra.mxu0 %v2703_v38  ;;  %v1257_v38 = vld [vmem:[%s4836_s7 + $0x1c0] sm:$0xff]  ;;  %v2783_v46 = vpack.c.bf16 %v1240_v21, %v1239_v13  ;;  %v1247_v60 = vld [vmem:[%s4836_s7 + $0x170] sm:$0xff] }
  0x8b   :  { %2738 = vmatprep.subr.bf16.mxu0 %v2737_v45  ;;  %v1209_v45 = vld [vmem:[%s4836_s7 + $0x40] sm:$0xff]  ;;  %v2785_v5 = vpack.c.bf16 %v1258_v14, %v1257_v38  ;;  %v1283_v14 = vld [vmem:[%s4836_s7 + $0x290] sm:$0xff] }
  0x8c   :  { %2736 = vmatpush3.bf16.msra.mxu1 %v2735_v33  ;;  %v1227_v33 = vld [vmem:[%s4836_s7 + $0xd0] sm:$0xff]  ;;  %v2755_v44 = vpack.c.bf16 %v1210_v2, %v1209_v45  ;;  %v1265_v21 = vld [vmem:[%s4836_s7 + $0x200] sm:$0xff]  ;;  %v372_v45 = vmax.f32 %v3184_v9, 0.0  ;;  %v1316_v9 = vld [vmem:[%s4836_s7 + $0x398] sm:$0xff] }
  0x8d   :  { %1126 = vmatmul.mubr.f32.vlgmr.msra.gmra.mrb[6].mxu0 %v368_v43  ;;  %2770 = vmatprep.subr.bf16.mxu1 %v2769_v32  ;;  %v1241_v43 = vld [vmem:[%s4836_s7 + $0x140] sm:$0xff]  ;;  %v1242_v32 = vld [vmem:[%s4836_s7 + $0x148] sm:$0xff]  ;;  %v2757_v17 = vpack.c.bf16 %v1228_v25, %v1227_v33 }
  0x8e   :  { %2740 = vmatpush3.bf16.msra.mxu0 %v2739_v6  ;;  %1477 = vmatprep.mubr.f32.mxu0 %v373_v36  ;;  %v1260_v6 = vld [vmem:[%s4836_s7 + $0x1d8] sm:$0xff]  ;;  %v1298_v33 = vld [vmem:[%s4836_s7 + $0x308] sm:$0xff] }
  0x8f   :  { %1196 = vmatmul.mubr.f32.vlgmr.msra.gmra.mrb[6].mxu1 %v370_v50  ;;  %2742 = vmatprep.subr.bf16.mxu0 %v2741_v0  ;;  %v1212_v36 = vld [vmem:[%s4836_s7 + $0x58] sm:$0xff]  ;;  %v2787_v50 = vpack.c.bf16 %v1242_v32, %v1241_v43  ;;  %v1229_v0 = vld [vmem:[%s4836_s7 + $0xe0] sm:$0xff]  ;;  %v2789_v11 = vpack.c.bf16 %v1260_v6, %v1259_v57  ;;  %v377_v43 = vmax.f32 %v3223_v28, 0.0  ;;  %v374_v6 = vmax.f32 %v3197_v15, 0.0  ;;  %v1286_v28 = vld [vmem:[%s4836_s7 + $0x2a8] sm:$0xff] }
  0x90   :  { %2772 = vmatpush3.bf16.msra.mxu1 %v2771_v53  ;;  %1547 = vmatprep.mubr.f32.mxu1 %v375_v23  ;;  %v1243_v53 = vld [vmem:[%s4836_s7 + $0x150] sm:$0xff]  ;;  %v2759_v10 = vpack.c.bf16 %v1212_v36, %v1211_v63  ;;  %v1261_v23 = vld [vmem:[%s4836_s7 + $0x1e0] sm:$0xff]  ;;  %v2761_v39 = vpack.c.bf16 %v1230_v18, %v1229_v0  ;;  %v1268_v57 = vld [vmem:[%s4836_s7 + $0x218] sm:$0xff]  ;;  %v379_v36 = vmax.f32 %v3238_v34, 0.0 }
  0x91   :  { %2774 = vmatprep.subr.bf16.mxu1 %v2773_v19  ;;  %v1262_v19 = vld [vmem:[%s4836_s7 + $0x1e8] sm:$0xff]  ;;  %v2791_v1 = vpack.c.bf16 %v1244_v40, %v1243_v53  ;;  %v1285_v63 = vld [vmem:[%s4836_s7 + $0x2a0] sm:$0xff]  ;;  %v1299_v0 = vld [vmem:[%s4836_s7 + $0x310] sm:$0xff] }
  0x92   :  { %2744 = vmatpush3.bf16.msra.mxu0 %v2743_v16  ;;  %v1214_v16 = vld [vmem:[%s4836_s7 + $0x68] sm:$0xff]  ;;  %v2793_v52 = vpack.c.bf16 %v1262_v19, %v1261_v23  ;;  %v1300_v15 = vld [vmem:[%s4836_s7 + $0x318] sm:$0xff]  ;;  %v2809_v53 = vpack.c.bf16 %v1286_v28, %v1285_v63  ;;  %v1269_v40 = vld [vmem:[%s4836_s7 + $0x220] sm:$0xff] }
  0x93   :  { %2746 = vmatprep.subr.bf16.mxu0 %v2745_v8  ;;  %v1232_v8 = vld [vmem:[%s4836_s7 + $0xf8] sm:$0xff]  ;;  %v2763_v12 = vpack.c.bf16 %v1214_v16, %v1213_v26  ;;  %v1318_v34 = vld [vmem:[%s4836_s7 + $0x3a8] sm:$0xff]  ;;  %v2839_v23 = vpack.c.bf16 %v1300_v15, %v1299_v0  ;;  %v1287_v19 = vld [vmem:[%s4836_s7 + $0x2b0] sm:$0xff] }
  0x94   :  { %2776 = vmatpush3.bf16.msra.mxu1 %v2775_v4  ;;  %v1246_v4 = vld [vmem:[%s4836_s7 + $0x168] sm:$0xff]  ;;  %v2765_v56 = vpack.c.bf16 %v1232_v8, %v1231_v22  ;;  %v1301_v16 = vld [vmem:[%s4836_s7 + $0x320] sm:$0xff]  ;;  %v1319_v8 = vld [vmem:[%s4836_s7 + $0x3b0] sm:$0xff] }
  0x95   :  { %2778 = vmatprep.subr.bf16.mxu1 %v2777_v48  ;;  %v1264_v48 = vld [vmem:[%s4836_s7 + $0x1f8] sm:$0xff]  ;;  %v2795_v49 = vpack.c.bf16 %v1246_v4, %v1245_v54  ;;  %v1271_v4 = vld [vmem:[%s4836_s7 + $0x230] sm:$0xff]  ;;  %v1277_v28 = vld [vmem:[%s4836_s7 + $0x260] sm:$0xff] }
  0x96   :  { %2748 = vmatpush3.bf16.msra.mxu0 %v2747_v31  ;;  %v1216_v31 = vld [vmem:[%s4836_s7 + $0x78] sm:$0xff]  ;;  %v2797_v58 = vpack.c.bf16 %v1264_v48, %v1263_v55  ;;  %v1289_v48 = vld [vmem:[%s4836_s7 + $0x2c0] sm:$0xff]  ;;  %v1295_v0 = vld [vmem:[%s4836_s7 + $0x2f0] sm:$0xff] }
  0x97   :  { %2750 = vmatprep.subr.bf16.mxu0 %v2749_v7  ;;  %v1282_v7 = vld [vmem:[%s4836_s7 + $0x288] sm:$0xff]  ;;  %v2767_v61 = vpack.c.bf16 %v1216_v31, %v1215_v20  ;;  %v1303_v31 = vld [vmem:[%s4836_s7 + $0x330] sm:$0xff]  ;;  %v1296_v15 = vld [vmem:[%s4836_s7 + $0x2f8] sm:$0xff] }
  0x98   :  { %2780 = vmatpush3.bf16.msra.mxu1 %v2779_v59  ;;  %v1248_v59 = vld [vmem:[%s4836_s7 + $0x178] sm:$0xff]  ;;  %v2801_v13 = vpack.c.bf16 %v1282_v7, %v1281_v37  ;;  %v1321_v7 = vld [vmem:[%s4836_s7 + $0x3c0] sm:$0xff] }
  0x99   :  { %2782 = vmatprep.subr.bf16.mxu1 %v2781_v51  ;;  %v1314_v51 = vld [vmem:[%s4836_s7 + $0x388] sm:$0xff]  ;;  %v2799_v38 = vpack.c.bf16 %v1248_v59, %v1247_v60  ;;  %v1273_v59 = vld [vmem:[%s4836_s7 + $0x240] sm:$0xff] }
  0x9a   :  { %2752 = vmatpush3.bf16.msra.mxu0 %v2751_v62  ;;  %v1266_v62 = vld [vmem:[%s4836_s7 + $0x208] sm:$0xff]  ;;  %v2833_v2 = vpack.c.bf16 %v1314_v51, %v1313_v3  ;;  %v1291_v51 = vld [vmem:[%s4836_s7 + $0x2d0] sm:$0xff] }
  0x9b   :  { %2754 = vmatprep.subr.bf16.mxu0 %v2753_v24  ;;  %v1284_v24 = vld [vmem:[%s4836_s7 + $0x298] sm:$0xff]  ;;  %v2803_v25 = vpack.c.bf16 %v1266_v62, %v1265_v21  ;;  %v1305_v62 = vld [vmem:[%s4836_s7 + $0x340] sm:$0xff] }
  0x9c   :  { %2784 = vmatpush3.bf16.msra.mxu1 %v2783_v46  ;;  %v1297_v46 = vld [vmem:[%s4836_s7 + $0x300] sm:$0xff]  ;;  %v2805_v32 = vpack.c.bf16 %v1284_v24, %v1283_v14  ;;  %v1323_v24 = vld [vmem:[%s4836_s7 + $0x3d0] sm:$0xff] }
  0x9d   :  { %2786 = vmatprep.subr.bf16.mxu1 %v2785_v5  ;;  %v1315_v5 = vld [vmem:[%s4836_s7 + $0x390] sm:$0xff] }
  0x9e   :  { %2756 = vmatpush3.bf16.msra.mxu0 %v2755_v44  ;;  %v1267_v44 = vld [vmem:[%s4836_s7 + $0x210] sm:$0xff] }
  0x9f   :  { %2758 = vmatprep.subr.bf16.mxu0 %v2757_v17  ;;  %v2835_v17 = vpack.c.bf16 %v1298_v33, %v1297_v46  ;;  %v2807_v18 = vpack.c.bf16 %v1268_v57, %v1267_v44  ;;  %v1275_v46 = vld [vmem:[%s4836_s7 + $0x250] sm:$0xff]  ;;  %v1276_v33 = vld [vmem:[%s4836_s7 + $0x258] sm:$0xff] }
  0xa0   :  { %2788 = vmatpush3.bf16.msra.mxu1 %v2787_v50  ;;  %v2837_v50 = vpack.c.bf16 %v1316_v9, %v1315_v5  ;;  %v1293_v5 = vld [vmem:[%s4836_s7 + $0x2e0] sm:$0xff]  ;;  %v1294_v9 = vld [vmem:[%s4836_s7 + $0x2e8] sm:$0xff]  ;;  %v1308_v44 = vld [vmem:[%s4836_s7 + $0x358] sm:$0xff]  ;;  %v2823_v57 = vpack.c.bf16 %v1276_v33, %v1275_v46 }
  0xa1   :  { %2790 = vmatprep.subr.bf16.mxu1 %v2789_v11  ;;  %v1317_v11 = vld [vmem:[%s4836_s7 + $0x3a0] sm:$0xff]  ;;  %v2825_v63 = vpack.c.bf16 %v1294_v9, %v1293_v5  ;;  %v1350_v33 = vld [vmem:[%s4836_s7 + $0x4a8] sm:$0xff] }
  0xa2   :  { %2760 = vmatpush3.bf16.msra.mxu0 %v2759_v10  ;;  %v1270_v10 = vld [vmem:[%s4836_s7 + $0x228] sm:$0xff]  ;;  %v2841_v26 = vpack.c.bf16 %v1318_v34, %v1317_v11  ;;  %v1309_v11 = vld [vmem:[%s4836_s7 + $0x360] sm:$0xff] }
  0xa3   :  { %2762 = vmatprep.subr.bf16.mxu0 %v2761_v39  ;;  %v1288_v39 = vld [vmem:[%s4836_s7 + $0x2b8] sm:$0xff]  ;;  %v2811_v22 = vpack.c.bf16 %v1270_v10, %v1269_v40  ;;  %v1310_v34 = vld [vmem:[%s4836_s7 + $0x368] sm:$0xff]  ;;  %v1327_v10 = vld [vmem:[%s4836_s7 + $0x3f0] sm:$0xff] }
  0xa4   :  { %2792 = vmatpush3.bf16.msra.mxu1 %v2791_v1  ;;  %v1302_v1 = vld [vmem:[%s4836_s7 + $0x328] sm:$0xff]  ;;  %v2813_v54 = vpack.c.bf16 %v1288_v39, %v1287_v19  ;;  %v2829_v19 = vpack.c.bf16 %v1296_v15, %v1295_v0  ;;  %v1279_v39 = vld [vmem:[%s4836_s7 + $0x270] sm:$0xff]  ;;  %v1352_v0 = vld [vmem:[%s4836_s7 + $0x4b8] sm:$0xff] }
  0xa5   :  { %2794 = vmatprep.subr.bf16.mxu1 %v2793_v52  ;;  %v1320_v52 = vld [vmem:[%s4836_s7 + $0x3b8] sm:$0xff]  ;;  %v2843_v55 = vpack.c.bf16 %v1302_v1, %v1301_v16  ;;  %v2859_v16 = vpack.c.bf16 %v1310_v34, %v1309_v11  ;;  %v1345_v1 = vld [vmem:[%s4836_s7 + $0x480] sm:$0xff]  ;;  %v1366_v34 = vld [vmem:[%s4836_s7 + $0x528] sm:$0xff] }
  0xa6   :  { %2764 = vmatpush3.bf16.msra.mxu0 %v2763_v12  ;;  %v1272_v12 = vld [vmem:[%s4836_s7 + $0x238] sm:$0xff]  ;;  %v2845_v20 = vpack.c.bf16 %v1320_v52, %v1319_v8  ;;  %v1365_v11 = vld [vmem:[%s4836_s7 + $0x520] sm:$0xff] }
  0xa7   :  { %2766 = vmatprep.subr.bf16.mxu0 %v2765_v56  ;;  %v1290_v56 = vld [vmem:[%s4836_s7 + $0x2c8] sm:$0xff]  ;;  %v2815_v37 = vpack.c.bf16 %v1272_v12, %v1271_v4  ;;  %v1312_v4 = vld [vmem:[%s4836_s7 + $0x378] sm:$0xff] }
  0xa8   :  { %2796 = vmatpush3.bf16.msra.mxu1 %v2795_v49  ;;  %v1304_v49 = vld [vmem:[%s4836_s7 + $0x338] sm:$0xff]  ;;  %v2817_v60 = vpack.c.bf16 %v1290_v56, %v1289_v48  ;;  %v1378_v48 = vld [vmem:[%s4836_s7 + $0x588] sm:$0xff] }
  0xa9   :  { %2798 = vmatprep.subr.bf16.mxu1 %v2797_v58  ;;  %v1322_v58 = vld [vmem:[%s4836_s7 + $0x3c8] sm:$0xff]  ;;  %v2847_v3 = vpack.c.bf16 %v1304_v49, %v1303_v31 }
  0xaa   :  { %2768 = vmatpush3.bf16.msra.mxu0 %v2767_v61  ;;  %v1274_v61 = vld [vmem:[%s4836_s7 + $0x248] sm:$0xff]  ;;  %v2849_v21 = vpack.c.bf16 %v1322_v58, %v1321_v7  ;;  %v1348_v7 = vld [vmem:[%s4836_s7 + $0x498] sm:$0xff] }
  0xab   :  { %2802 = vmatprep.subr.bf16.mxu0 %v2801_v13  ;;  %v1292_v13 = vld [vmem:[%s4836_s7 + $0x2d8] sm:$0xff]  ;;  %v2819_v14 = vpack.c.bf16 %v1274_v61, %v1273_v59  ;;  %v1330_v31 = vld [vmem:[%s4836_s7 + $0x408] sm:$0xff]  ;;  %v376_v59 = vmax.f32 %v3221_v27, 0.0 }
  0xac   :  { %2800 = vmatpush3.bf16.msra.mxu1 %v2799_v38  ;;  %v1306_v38 = vld [vmem:[%s4836_s7 + $0x348] sm:$0xff]  ;;  %v1380_v27 = vld [vmem:[%s4836_s7 + $0x598] sm:$0xff] }
  0xad   :  { %1478 = vmatmul.mubr.f32.vlgmr.msra.gmra.mrb[8].mxu0 %v372_v45  ;;  %2834 = vmatprep.subr.bf16.mxu1 %v2833_v2  ;;  %v1324_v45 = vld [vmem:[%s4836_s7 + $0x3d8] sm:$0xff]  ;;  %v2821_v2 = vpack.c.bf16 %v1292_v13, %v1291_v51  ;;  %v1362_v51 = vld [vmem:[%s4836_s7 + $0x508] sm:$0xff] }
  0xae   :  { %2804 = vmatpush3.bf16.msra.mxu0 %v2803_v25  ;;  %1617 = vmatprep.mubr.f32.mxu0 %v377_v43  ;;  %v2851_v25 = vpack.c.bf16 %v1306_v38, %v1305_v62  ;;  %v2853_v43 = vpack.c.bf16 %v1324_v45, %v1323_v24  ;;  %v381_v62 = vmax.f32 %v3252_v41, 0.0  ;;  %v1332_v24 = vld [vmem:[%s4836_s7 + $0x418] sm:$0xff]  ;;  %v378_v45 = vmax.f32 %v3225_v29, 0.0  ;;  %v1349_v41 = vld [vmem:[%s4836_s7 + $0x4a0] sm:$0xff]  ;;  %v1363_v29 = vld [vmem:[%s4836_s7 + $0x510] sm:$0xff] }
  0xaf   :  { %2806 = vmatprep.subr.bf16.mxu0 %v2805_v32  ;;  %1548 = vmatmul.mubr.f32.vlgmr.msra.gmra.mrb[8].mxu1 %v374_v6  ;;  %v1307_v32 = vld [vmem:[%s4836_s7 + $0x350] sm:$0xff]  ;;  %v1325_v6 = vld [vmem:[%s4836_s7 + $0x3e0] sm:$0xff] }
  0xb0   :  { %2836 = vmatpush3.bf16.msra.mxu1 %v2835_v17  ;;  %1687 = vmatprep.mubr.f32.mxu1 %v379_v36  ;;  %v1326_v17 = vld [vmem:[%s4836_s7 + $0x3e8] sm:$0xff] }
  0xb1   :  { %2838 = vmatprep.subr.bf16.mxu1 %v2837_v50  ;;  %v1278_v36 = vld [vmem:[%s4836_s7 + $0x268] sm:$0xff]  ;;  %v2855_v50 = vpack.c.bf16 %v1308_v44, %v1307_v32 }
  0xb2   :  { %2808 = vmatpush3.bf16.msra.mxu0 %v2807_v18  ;;  %v2857_v18 = vpack.c.bf16 %v1326_v17, %v1325_v6  ;;  %v2827_v40 = vpack.c.bf16 %v1278_v36, %v1277_v28  ;;  %v2873_v6 = vpack.c.bf16 %v1350_v33, %v1349_v41  ;;  %v1333_v17 = vld [vmem:[%s4836_s7 + $0x420] sm:$0xff]  ;;  %v1340_v41 = vld [vmem:[%s4836_s7 + $0x458] sm:$0xff] }
  0xb3   :  { %2810 = vmatprep.subr.bf16.mxu0 %v2809_v53 }
  0xb4   :  { %2840 = vmatpush3.bf16.msra.mxu1 %v2839_v23  ;;  %v1328_v23 = vld [vmem:[%s4836_s7 + $0x3f8] sm:$0xff] }
  0xb5   :  { %2842 = vmatprep.subr.bf16.mxu1 %v2841_v26  ;;  %v1280_v26 = vld [vmem:[%s4836_s7 + $0x278] sm:$0xff]  ;;  %v2861_v52 = vpack.c.bf16 %v1328_v23, %v1327_v10 }
  0xb6   :  { %2812 = vmatpush3.bf16.msra.mxu0 %v2811_v22  ;;  %v1346_v22 = vld [vmem:[%s4836_s7 + $0x488] sm:$0xff]  ;;  %v2831_v12 = vpack.c.bf16 %v1280_v26, %v1279_v39  ;;  %v1384_v10 = vld [vmem:[%s4836_s7 + $0x5b8] sm:$0xff] }
  0xb7   :  { %2814 = vmatprep.subr.bf16.mxu0 %v2813_v54  ;;  %v1311_v54 = vld [vmem:[%s4836_s7 + $0x370] sm:$0xff]  ;;  %v2865_v56 = vpack.c.bf16 %v1346_v22, %v1345_v1  ;;  %v1336_v39 = vld [vmem:[%s4836_s7 + $0x438] sm:$0xff]  ;;  %v1353_v1 = vld [vmem:[%s4836_s7 + $0x4c0] sm:$0xff] }
  0xb8   :  { %2844 = vmatpush3.bf16.msra.mxu1 %v2843_v55  ;;  %v218_v53 = vpop.xlane.xlu1 %217  ;;  %v1377_v55 = vld [vmem:[%s4836_s7 + $0x580] sm:$0xff]  ;;  %v2863_v49 = vpack.c.bf16 %v1312_v4, %v1311_v54  ;;  %v1354_v22 = vld [vmem:[%s4836_s7 + $0x4c8] sm:$0xff]  ;;  %v1367_v4 = vld [vmem:[%s4836_s7 + $0x530] sm:$0xff] }
  0xb9   :  { %2846 = vmatprep.subr.bf16.mxu1 %v2845_v20  ;;  %v4511_v8 = vmul.f32 0.00061236985, %v218_v53  ;;  %v1329_v20 = vld [vmem:[%s4836_s7 + $0x400] sm:$0xff]  ;;  %v2897_v61 = vpack.c.bf16 %v1378_v48, %v1377_v55 }
  0xba   :  { %2816 = vmatpush3.bf16.msra.mxu0 %v2815_v37  ;;  %v1347_v37 = vld [vmem:[%s4836_s7 + $0x490] sm:$0xff]  ;;  %v2867_v13 = vpack.c.bf16 %v1330_v31, %v1329_v20  ;;  %v1385_v48 = vld [vmem:[%s4836_s7 + $0x5c0] sm:$0xff]  ;;  %v261_v20 = vlaneseq }
  0xbb   :  { %2818 = vmatprep.subr.bf16.mxu0 %v2817_v60  ;;  %v248_v58 = vmul.f32 1633.0, %v4511_v8  ;;  %v2869_v38 = vpack.c.bf16 %v1348_v7, %v1347_v37  ;;  %v1337_v37 = vld [vmem:[%s4836_s7 + $0x440] sm:$0xff]  ;;  %v1338_v7 = vld [vmem:[%s4836_s7 + $0x448] sm:$0xff] }
  0xbc   :  { %2848 = vmatpush3.bf16.msra.mxu1 %v2847_v3  ;;  %v1361_v3 = vld [vmem:[%s4836_s7 + $0x500] sm:$0xff] }
  0xbd   :  { %2850 = vmatprep.subr.bf16.mxu1 %v2849_v21  ;;  %v1379_v21 = vld [vmem:[%s4836_s7 + $0x590] sm:$0xff]  ;;  %v2899_v46 = vpack.c.bf16 %v1362_v51, %v1361_v3  ;;  %v249_v5 = vmul.f32 %v248_v58, %v4511_v8 }
  0xbe   :  { %2820 = vmatpush3.bf16.msra.mxu0 %v2819_v14  ;;  %v1331_v14 = vld [vmem:[%s4836_s7 + $0x410] sm:$0xff]  ;;  %v2901_v9 = vpack.c.bf16 %v1380_v27, %v1379_v21  ;;  %v1370_v21 = vld [vmem:[%s4836_s7 + $0x548] sm:$0xff] }
  0xbf   :  { %2822 = vmatprep.subr.bf16.mxu0 %v2821_v2  ;;  %v246_v32 = vpop.xlane.xlu1 %245  ;;  %v2871_v44 = vpack.c.bf16 %v1332_v24, %v1331_v14  ;;  %v1388_v14 = vld [vmem:[%s4836_s7 + $0x5d8] sm:$0xff]  ;;  %v4657_v24 = vshrl.u32 %v261_v20, 7 }
  0xc0   :  { %2852 = vmatpush3.bf16.msra.mxu1 %v2851_v25  ;;  %v383_v25 = vmax.f32 %v3266_v47, 0.0  ;;  %v1381_v47 = vld [vmem:[%s4836_s7 + $0x5a0] sm:$0xff]  ;;  %v250_v15 = vsub.f32 %v246_v32, %v249_v5 }
  0xc1   :  { %2854 = vmatprep.subr.bf16.mxu1 %v2853_v43  ;;  %v1364_v43 = vld [vmem:[%s4836_s7 + $0x518] sm:$0xff]  ;;  %v1357_v5 = vld [vmem:[%s4836_s7 + $0x4e0] sm:$0xff] }
  0xc2   :  { %2824 = vmatpush3.bf16.msra.mxu0 %v2823_v57  ;;  %v1382_v57 = vld [vmem:[%s4836_s7 + $0x5a8] sm:$0xff]  ;;  %v2903_v36 = vpack.c.bf16 %v1364_v43, %v1363_v29  ;;  %v268_v29 = vsub.s32 1, %v4657_v24  ;;  %v263_v43 = vsub.s32 0, %v4657_v24 }
  0xc3   :  { %2826 = vmatprep.subr.bf16.mxu0 %v2825_v63  ;;  %v1334_v63 = vld [vmem:[%s4836_s7 + $0x428] sm:$0xff] }
  0xc4   :  { %2856 = vmatpush3.bf16.msra.mxu1 %v2855_v50  ;;  %v1351_v50 = vld [vmem:[%s4836_s7 + $0x4b0] sm:$0xff]  ;;  %v2875_v53 = vpack.c.bf16 %v1334_v63, %v1333_v17  ;;  %v1390_v17 = vld [vmem:[%s4836_s7 + $0x5e8] sm:$0xff] }
  0xc5   :  { %2858 = vmatprep.subr.bf16.mxu1 %v2857_v18  ;;  %v2905_v18 = vpack.c.bf16 %v1382_v57, %v1381_v47  ;;  %v2877_v23 = vpack.c.bf16 %v1352_v0, %v1351_v50  ;;  %v1372_v47 = vld [vmem:[%s4836_s7 + $0x558] sm:$0xff]  ;;  %v4698_v50 = vld [vmem:[%s4837_s2] sm:$0xff] }
  0xc6   :  { %2828 = vmatpush3.bf16.msra.mxu0 %v2827_v40  ;;  %v1383_v40 = vld [vmem:[%s4836_s7 + $0x5b0] sm:$0xff] }
  0xc7   :  { %2830 = vmatprep.subr.bf16.mxu0 %v2829_v19  ;;  %v1335_v19 = vld [vmem:[%s4836_s7 + $0x430] sm:$0xff]  ;;  %v2909_v54 = vpack.c.bf16 %v1384_v10, %v1383_v40  ;;  %v1373_v40 = vld [vmem:[%s4836_s7 + $0x560] sm:$0xff]  ;;  %v1374_v10 = vld [vmem:[%s4836_s7 + $0x568] sm:$0xff] }
  0xc8   :  { %2860 = vmatpush3.bf16.msra.mxu1 %v2859_v16  ;;  %v2907_v16 = vpack.c.bf16 %v1366_v34, %v1365_v11  ;;  %v2879_v55 = vpack.c.bf16 %v1336_v39, %v1335_v19  ;;  %v269_v11 = vrot.slane %v4698_v50, %v268_v29  ;;  %v264_v34 = vrot.slane %v4698_v50, %v263_v43 }
  0xc9   :  { %2862 = vmatprep.subr.bf16.mxu1 %v2861_v52  ;;  %v251_v52 = vmax.f32 %v250_v15, 0.0  ;;  %v1359_v15 = vld [vmem:[%s4836_s7 + $0x4f0] sm:$0xff] }
  0xca   :  { %v126_v60 = vpop.xlane.xlu0 %125  ;;  %2832 = vmatpush3.bf16.msra.mxu0 %v2831_v12  ;;  %v1368_v12 = vld [vmem:[%s4836_s7 + $0x538] sm:$0xff] }
  0xcb   :  { %2866 = vmatprep.subr.bf16.mxu0 %v2865_v56  ;;  %v4559_v2 = vmul.f32 0.00048828125, %v126_v60  ;;  %v1386_v56 = vld [vmem:[%s4836_s7 + $0x5c8] sm:$0xff]  ;;  %v2911_v60 = vpack.c.bf16 %v1368_v12, %v1367_v4  ;;  %v4643_v3 = vmul.f32 0.0006127451, %v251_v52  ;;  %v286_v52 = vsub.s32 4, %v4657_v24  ;;  %v1343_v4 = vld [vmem:[%s4836_s7 + $0x470] sm:$0xff] }
  0xcc   :  { %2864 = vmatpush3.bf16.msra.mxu1 %v2863_v49  ;;  %v2881_v49 = vpack.c.bf16 %v1354_v22, %v1353_v1  ;;  %v2913_v51 = vpack.c.bf16 %v1386_v56, %v1385_v48  ;;  %v274_v1 = vsub.s32 2, %v4657_v24  ;;  %v280_v22 = vsub.s32 3, %v4657_v24  ;;  %v1344_v12 = vld [vmem:[%s4836_s7 + $0x478] sm:$0xff] }
  0xcd   :  { %1618 = vmatmul.mubr.f32.vlgmr.msra.gmra.mrb[10].mxu0 %v376_v59  ;;  %2898 = vmatprep.subr.bf16.mxu1 %v2897_v61  ;;  %v161_v28 = vmul.f32 2048.0, %v4559_v2  ;;  %v1355_v59 = vld [vmem:[%s4836_s7 + $0x4d0] sm:$0xff]  ;;  %v1356_v61 = vld [vmem:[%s4836_s7 + $0x4d8] sm:$0xff]  ;;  %2955 = vrsqrt.f32 %v4643_v3  ;;  %v2923_v48 = vpack.c.bf16 %v1374_v10, %v1373_v40  ;;  %vm255_vm3 = vcmp.eq.f32.partialorder %v4643_v3, inf  ;;  %v1397_v40 = vld [vmem:[%s4836_s7 + $0x620] sm:$0xff] }
  0xce   :  { %2868 = vmatpush3.bf16.msra.mxu0 %v2867_v13  ;;  %1757 = vmatprep.mubr.f32.mxu0 %v381_v62  ;;  %v1369_v13 = vld [vmem:[%s4836_s7 + $0x540] sm:$0xff]  ;;  %v2883_v62 = vpack.c.bf16 %v1338_v7, %v1337_v37  ;;  %v1376_v37 = vld [vmem:[%s4836_s7 + $0x578] sm:$0xff]  ;;  %v2895_v7 = vpack.c.bf16 %v1344_v12, %v1343_v4  ;;  %vm257_vm5 = vcmp.eq.f32.partialorder %v4643_v3, 0.0  ;;  %v1398_v10 = vld [vmem:[%s4836_s7 + $0x628] sm:$0xff] }
  0xcf   :  { %2870 = vmatprep.subr.bf16.mxu0 %v2869_v38  ;;  %1688 = vmatmul.mubr.f32.vlgmr.msra.gmra.mrb[10].mxu1 %v378_v45  ;;  %v162_v26 = vmul.f32 %v161_v28, %v4559_v2  ;;  %v1387_v38 = vld [vmem:[%s4836_s7 + $0x5d0] sm:$0xff]  ;;  %v2885_v45 = vpack.c.bf16 %v1356_v61, %v1355_v59  ;;  %v1341_v28 = vld [vmem:[%s4836_s7 + $0x460] sm:$0xff]  ;;  %v275_v59 = vrot.slane %v4698_v50, %v274_v1 }
  0xd0   :  { %2900 = vmatpush3.bf16.msra.mxu1 %v2899_v46  ;;  %1827 = vmatprep.mubr.f32.mxu1 %v383_v25  ;;  %v1339_v46 = vld [vmem:[%s4836_s7 + $0x450] sm:$0xff]  ;;  %v2915_v25 = vpack.c.bf16 %v1370_v21, %v1369_v13  ;;  %v2917_v32 = vpack.c.bf16 %v1388_v14, %v1387_v38  ;;  %v281_v61 = vrot.slane %v4698_v50, %v280_v22  ;;  %v1393_v13 = vld [vmem:[%s4836_s7 + $0x600] sm:$0xff]  ;;  %v1394_v21 = vld [vmem:[%s4836_s7 + $0x608] sm:$0xff]  ;;  %v380_v38 = vmax.f32 %v3240_v35, 0.0 }
  0xd1   :  { %2902 = vmatprep.subr.bf16.mxu1 %v2901_v9  ;;  %v1358_v9 = vld [vmem:[%s4836_s7 + $0x4e8] sm:$0xff]  ;;  %v2887_v57 = vpack.c.bf16 %v1340_v41, %v1339_v46  ;;  %v382_v41 = vmax.f32 %v3254_v42, 0.0  ;;  %v1395_v42 = vld [vmem:[%s4836_s7 + $0x610] sm:$0xff]  ;;  %v1400_v22 = vld [vmem:[%s4836_s7 + $0x638] sm:$0xff] }
  0xd2   :  { %2872 = vmatpush3.bf16.msra.mxu0 %v2871_v44  ;;  %v1371_v44 = vld [vmem:[%s4836_s7 + $0x550] sm:$0xff]  ;;  %v2889_v63 = vpack.c.bf16 %v1358_v9, %v1357_v5  ;;  %v2930_v9 = vpack.c.bf16 %v1394_v21, %v1393_v13  ;;  %v317_v13 = vld [vmem:[%s4839_s4] sm:$0x3] }
  0xd3   :  { %2874 = vmatprep.subr.bf16.mxu0 %v2873_v6  ;;  %v1389_v6 = vld [vmem:[%s4836_s7 + $0x5e0] sm:$0xff]  ;;  %v2919_v0 = vpack.c.bf16 %v1372_v47, %v1371_v44  ;;  %v2973_v47 = vmov 0.0|0.0   ;;  %v1399_v1 = vld [vmem:[%s4836_s7 + $0x630] sm:$0xff]  ;;  %v344_v21 = vrot.slane %v317_v13, %v268_v29 }
  0xd4   :  { %2904 = vmatpush3.bf16.msra.mxu1 %v2903_v36  ;;  %v1342_v36 = vld [vmem:[%s4836_s7 + $0x468] sm:$0xff] }
  0xd5   :  { %2906 = vmatprep.subr.bf16.mxu1 %v2905_v18  ;;  %v1360_v18 = vld [vmem:[%s4836_s7 + $0x4f8] sm:$0xff]  ;;  %v2891_v39 = vpack.c.bf16 %v1342_v36, %v1341_v28  ;;  %v304_v28 = vsub.s32 7, %v4657_v24 }
  0xd6   :  { %2876 = vmatpush3.bf16.msra.mxu0 %v2875_v53  ;;  %v2921_v53 = vpack.c.bf16 %v1390_v17, %v1389_v6 }
  0xd7   :  { %v159_v31 = vpop.xlane.xlu0 %158  ;;  %2878 = vmatprep.subr.bf16.mxu0 %v2877_v23  ;;  %v109_v23 = vpop.xlane.xlu1 %108 }
  0xd8   :  { %v163_v58 = vsub.f32 %v159_v31, %v162_v26  ;;  %2908 = vmatpush3.bf16.msra.mxu1 %v2907_v16  ;;  %v1391_v26 = vld [vmem:[%s4836_s7 + $0x5f0] sm:$0xff]  ;;  %v1392_v16 = vld [vmem:[%s4836_s7 + $0x5f8] sm:$0xff]  ;;  %v270_v56 = vmul.f32 %v269_v11, %v109_v23 }
  0xd9   :  { %2910 = vmatprep.subr.bf16.mxu1 %v2909_v54  ;;  %v2893_v54 = vpack.c.bf16 %v1360_v18, %v1359_v15  ;;  %v2925_v31 = vpack.c.bf16 %v1392_v16, %v1391_v26  ;;  %v2975_v18 = vmov 0.0   ;;  %v2936_v26 = vpack.c.bf16 %v1398_v10, %v1397_v40 }
  0xda   :  { %v164_v27 = vmax.f32 %v163_v58, 0.0  ;;  %2880 = vmatpush3.bf16.msra.mxu0 %v2879_v55  ;;  %v292_v55 = vsub.s32 5, %v4657_v24  ;;  %v2956_v58 = vpop.eup %2955 }
  0xdb   :  { %2882 = vmatprep.subr.bf16.mxu0 %v2881_v49  ;;  %v92_v19 = vpop.xlane.xlu0 %91  ;;  %v1375_v49 = vld [vmem:[%s4836_s7 + $0x570] sm:$0xff]  ;;  %v254_v35 = vmul.f32 %v2956_v58, %v4643_v3 }
  0xdc   :  { %v4665_v33 = vmul.f32 0.0004885198, %v164_v27  ;;  %2912 = vmatpush3.bf16.msra.mxu1 %v2911_v60  ;;  %v265_v20 = vmul.f32 %v264_v34, %v92_v19  ;;  %v298_v60 = vsub.s32 6, %v4657_v24  ;;  %v2927_v14 = vpack.c.bf16 %v1376_v37, %v1375_v49  ;;  %v1403_v58 = vld [vmem:[%s4836_s7 + $0x650] sm:$0xff] }
  0xdd   :  { %2914 = vmatprep.subr.bf16.mxu1 %v2913_v51  ;;  %v287_v51 = vrot.slane %v4698_v50, %v286_v52  ;;  %v256_v34 = vsel %vm255_vm3, %v4643_v3, %v254_v35  ;;  %v305_v19 = vrot.slane %v4698_v50, %v304_v28 }
  0xde   :  { %2957 = vrsqrt.f32 %v4665_v33  ;;  %2884 = vmatpush3.bf16.msra.mxu0 %v2883_v62  ;;  %v293_v62 = vrot.slane %v4698_v50, %v292_v55  ;;  %vm168_vm1 = vcmp.eq.f32.partialorder %v4665_v33, inf  ;;  %vm170_vm2 = vcmp.eq.f32.partialorder %v4665_v33, 0.0 }
  0xdf   :  { %2886 = vmatprep.subr.bf16.mxu0 %v2885_v45  ;;  %v271_v45 = vadd.f32 %v270_v56, %v265_v20  ;;  %v188_v5 = vpop.xlane.xlu0 %187  ;;  %v299_v36 = vrot.slane %v4698_v50, %v298_v60  ;;  %v1941_v50 = vld [vmem:[%s4838_s3] ss:$0 sm:$0xff]  ;;  %v1402_v56 = vld [vmem:[%s4836_s7 + $0x648] sm:$0xff]  ;;  %v1404_v60 = vld [vmem:[%s4836_s7 + $0x658] sm:$0xff] }
  0xe0   :  { %2916 = vmatpush3.bf16.msra.mxu1 %v2915_v25  ;;  %v171_v25 = vand.u32 2147483648, %v4665_v33 }
  0xe1   :  { %2918 = vmatprep.subr.bf16.mxu1 %v2917_v32  ;;  %v276_v32 = vmul.f32 %v275_v59, %v4559_v2  ;;  %v203_v2 = vpop.xlane.xlu1 %202 }
  0xe2   :  { %2888 = vmatpush3.bf16.msra.mxu0 %v2887_v57  ;;  %v1396_v57 = vld [vmem:[%s4836_s7 + $0x618] sm:$0xff] }
  0xe3   :  { %2890 = vmatprep.subr.bf16.mxu0 %v2889_v63  ;;  %v277_v17 = vadd.f32 %v276_v32, %v271_v45  ;;  %v288_v63 = vmul.f32 %v287_v51, %v188_v5  ;;  %v2933_v15 = vpack.c.bf16 %v1396_v57, %v1395_v42  ;;  %v2945_v51 = vpack.c.bf16 %v1404_v60, %v1403_v58 }
  0xe4   :  { %2920 = vmatpush3.bf16.msra.mxu1 %v2919_v0  ;;  %v258_v0 = vand.u32 2147483648, %v4643_v3  ;;  %v300_v3 = vmul.f32 %v299_v36, %v4511_v8  ;;  %v2939_v8 = vpack.c.bf16 %v1400_v22, %v1399_v1  ;;  %v1942_v1 = vld [vmem:[%s4840_s5] ss:$0 sm:$0xff] }
  0xe5   :  { %2922 = vmatprep.subr.bf16.mxu1 %v2921_v53  ;;  %v294_v53 = vmul.f32 %v293_v62, %v203_v2  ;;  %v1405_v62 = vld [vmem:[%s4836_s7 + $0x660] sm:$0x1] }
  0xe6   :  { %2892 = vmatpush3.bf16.msra.mxu0 %v2891_v39  ;;  %v259_v39 = vsel %vm257_vm5, %v258_v0, %v256_v34 }
  0xe7   :  { %2894 = vmatprep.subr.bf16.mxu0 %v2893_v54  ;;  %v306_v52 = vmul.f32 %v305_v19, %v259_v39 }
  0xe8   :  { %v2958_v27 = vpop.eup %2957  ;;  %2924 = vmatpush3.bf16.msra.mxu1 %v2923_v48  ;;  %v1401_v48 = vld [vmem:[%s4836_s7 + $0x640] sm:$0xff] }
  0xe9   :  { %v167_v46 = vmul.f32 %v2958_v27, %v4665_v33  ;;  %2926 = vmatprep.subr.bf16.mxu1 %v2925_v31  ;;  %v2942_v37 = vpack.c.bf16 %v1402_v56, %v1401_v48  ;;  %v321_v27 = vrot.slane %v317_v13, %v263_v43 }
  0xea   :  { %2896 = vmatpush3.bf16.msra.mxu0 %v2895_v7 }
  0xeb   :  { %v169_v44 = vsel %vm168_vm1, %v4665_v33, %v167_v46  ;;  %2929 = vmatprep.subr.bf16.mxu0 %v2973_v47 }
  0xec   :  { %v172_v6 = vsel %vm170_vm2, %v171_v25, %v169_v44  ;;  %2928 = vmatpush3.bf16.msra.mxu1 %v2927_v14 }
  0xed   :  { %v282_v33 = vmul.f32 %v281_v61, %v172_v6  ;;  %1758 = vmatmul.mubr.f32.vlgmr.msra.gmra.mrb[12].mxu0 %v380_v38  ;;  %v384_v38 = vmax.f32 %v3227_v30, 0.0  ;;  %v2976_v30 = vmov 1  }
  0xee   :  { %2931 = vmatpush3.bf16.msra.mxu0 %v2930_v9  ;;  %2478 = vmatprep.mubr.msk.f32.mxu0 %vm2974_vm4, %v2975_v18 }
  0xef   :  { %v283_v11 = vadd.f32 %v282_v33, %v277_v17  ;;  %2932 = vmatprep.subr.bf16.mxu0 %v2973_v47  ;;  %1828 = vmatmul.mubr.f32.vlgmr.msra.gmra.mrb[12].mxu1 %v382_v41 }
  0xf0   :  { %2953 = vset.pattern.permute.xlu1 %v2976_v30 }
  0xf1   :  { %v289_v23 = vadd.f32 %v288_v63, %v283_v11 }
  0xf2   :  { %2934 = vmatpush3.bf16.msra.mxu0 %v2933_v15 }
  0xf3   :  { %v295_v16 = vadd.f32 %v294_v53, %v289_v23  ;;  %2935 = vmatprep.subr.bf16.mxu0 %v2973_v47 }
  0xf5   :  { %v301_v54 = vadd.f32 %v300_v3, %v295_v16 }
  0xf6   :  { %2937 = vmatpush3.bf16.msra.mxu0 %v2936_v26 }
  0xf7   :  { %v1980_v4 = vpop.f32.mrb[0].mxu0  ;;  %v307_v55 = vadd.f32 %v306_v52, %v301_v54  ;;  %2938 = vmatprep.subr.bf16.mxu0 %v2973_v47 }
  0xf8   :  { %v1981_v12 = vpop.f32.mrb[1].mxu0 }
  0xf9   :  { %v1982_v20 = vadd.f32 %v1981_v12, %v1980_v4  ;;  %v315_v31 = vadd.f32 %v1941_v50, %v307_v55 }
  0xfa   :  { %v2015_v49 = vpop.f32.mrb[0].mxu1  ;;  %2940 = vmatpush3.bf16.msra.mxu0 %v2939_v8 }
  0xfb   :  { %v2016_v7 = vpop.f32.mrb[1].mxu1  ;;  %2959 = vtanh.f32 %v315_v31  ;;  %2941 = vmatprep.subr.bf16.mxu0 %v2973_v47 }
  0xfc   :  { %v2017_v59 = vadd.f32 %v2016_v7, %v2015_v49 }
  0xfe   :  { %v778_v61 = vadd.f32 %v2017_v59, %v1982_v20  ;;  %2943 = vmatpush3.bf16.msra.mxu0 %v2942_v37 }
  0xff   :  { %2944 = vmatprep.subr.bf16.mxu0 %v2973_v47  ;;  %v2977_v47 = vmov 0  }
 0x100   :  { %2952 = vset.pattern.permute.xlu0 %v2977_v47 }
 0x102   :  { %2946 = vmatpush3.bf16.msra.mxu0 %v2945_v51 }
 0x103   :  { %2476 = vmatprep.subr.mxu0 %v2975_v18 }
 0x105   :  { %v2960_v14 = vpop.eup %2959 }
 0x106   :  { %v345_v45 = vmul.f32 %v2960_v14, %v344_v21  ;;  %v322_v46 = vmul.f32 %v2960_v14, %v321_v27  ;;  %2477 = vmatpush3.msk.msra.mxu0 %vm1409_vm6, %v1405_v62 }
 0x107   :  { %2479 = vmatmul.mubr.msk.f32.vlgmr.msra.gmra.mrb[14].mxu0 %vm181_vm0, %v384_v38 }
 0x108   :  { %v346_v29 = vsel %vm323_vm7, %v345_v45, 0.0  ;;  %v324_v41 = vsel %vm323_vm7, %v322_v46, 0.0 }
 0x109   :  { %347 = vadd.xlane.f32.xlu1 %v346_v29  ;;  %325 = vadd.xlane.f32.xlu0 %v324_v41 }
 0x120   :  { %v2050_v24 = vpop.f32.mrb[2].mxu0 }
 0x121   :  { %v2051_v43 = vpop.f32.mrb[3].mxu0 }
 0x122   :  { %v2052_v25 = vadd.f32 %v2051_v43, %v2050_v24  ;;  %v2085_v5 = vpop.f32.mrb[2].mxu1 }
 0x123   :  { %v2086_v9 = vpop.f32.mrb[3].mxu1 }
 0x124   :  { %v848_v32 = vadd.f32 %v2052_v25, %v778_v61  ;;  %v2087_v44 = vadd.f32 %v2086_v9, %v2085_v5 }
 0x126   :  { %v918_v35 = vadd.f32 %v2087_v44, %v848_v32  ;;  %v1947_v32 = vld [vmem:[%s4841_s8] ss:$0 sm:$0xff] }
 0x140   :  { %v2120_v42 = vpop.f32.mrb[4].mxu0 }
 0x141   :  { %v2121_v57 = vpop.f32.mrb[5].mxu0 }
 0x142   :  { %v2122_v6 = vadd.f32 %v2121_v57, %v2120_v42  ;;  %v2155_v2 = vpop.f32.mrb[4].mxu1 }
 0x143   :  { %v2156_v17 = vpop.f32.mrb[5].mxu1 }
 0x144   :  { %v988_v33 = vadd.f32 %v2122_v6, %v918_v35  ;;  %v2157_v63 = vadd.f32 %v2156_v17, %v2155_v2 }
 0x146   :  { %v1058_v28 = vadd.f32 %v2157_v63, %v988_v33 }
 0x160   :  { %v2190_v36 = vpop.f32.mrb[6].mxu0 }
 0x161   :  { %v2191_v0 = vpop.f32.mrb[7].mxu0 }
 0x162   :  { %v2192_v15 = vadd.f32 %v2191_v0, %v2190_v36  ;;  %v2225_v18 = vpop.f32.mrb[6].mxu1 }
 0x163   :  { %v2226_v11 = vpop.f32.mrb[7].mxu1 }
 0x164   :  { %v1128_v34 = vadd.f32 %v2192_v15, %v1058_v28  ;;  %v2227_v53 = vadd.f32 %v2226_v11, %v2225_v18 }
 0x166   :  { %v1198_v40 = vadd.f32 %v2227_v53, %v1128_v34 }
 0x180   :  { %v2260_v10 = vpop.f32.mrb[8].mxu0 }
 0x181   :  { %v2261_v23 = vpop.f32.mrb[9].mxu0 }
 0x182   :  { %v2295_v19 = vpop.f32.mrb[8].mxu1  ;;  %v2262_v39 = vadd.f32 %v2261_v23, %v2260_v10 }
 0x183   :  { %v2296_v26 = vpop.f32.mrb[9].mxu1 }
 0x184   :  { %v2297_v3 = vadd.f32 %v2296_v26, %v2295_v19 }
 0x186   :  { %v1550_v16 = vadd.f32 %v2297_v3, %v2262_v39 }
 0x196   :  { %v348_v22 = vpop.xlane.xlu1 %347  ;;  %v326_v52 = vpop.xlane.xlu0 %325 }
 0x197   :  { %v349_v54 = vadd.f32 %v1942_v1, %v348_v22  ;;  %v334_v4 = vadd.f32 %v1942_v1, %v326_v52 }
 0x199   :  { %v1944_v50 = vmul.f32 -1.442695, %v349_v54  ;;  %v1943_v8 = vmul.f32 -1.442695, %v334_v4 }
 0x19b   :  { %2961 = vpow2.f32 %v1944_v50 }
 0x19c   :  { %2963 = vpow2.f32 %v1943_v8 }
 0x1a0   :  { %v2330_v12 = vpop.f32.mrb[10].mxu0 }
 0x1a1   :  { %v2331_v55 = vpop.f32.mrb[11].mxu0 }
 0x1a2   :  { %v2332_v48 = vadd.f32 %v2331_v55, %v2330_v12  ;;  %v2365_v56 = vpop.f32.mrb[10].mxu1 }
 0x1a3   :  { %v2366_v20 = vpop.f32.mrb[11].mxu1 }
 0x1a4   :  { %v1620_v31 = vadd.f32 %v2332_v48, %v1550_v16  ;;  %v2367_v49 = vadd.f32 %v2366_v20, %v2365_v56 }
 0x1a5   :  { %v2962_v37 = vpop.eup %2961 }
 0x1a6   :  { %v2964_v7 = vpop.eup %2963  ;;  %v353_v58 = vadd.f32 1.0, %v2962_v37  ;;  %v1690_v60 = vadd.f32 %v2367_v49, %v1620_v31 }
 0x1a7   :  { %v338_v59 = vadd.f32 1.0, %v2964_v7 }
 0x1a8   :  { %2965 = vrcp.f32 %v353_v58 }
 0x1a9   :  { %2967 = vrcp.f32 %v338_v59 }
 0x1b2   :  { %v2966_v61 = vpop.eup %2965 }
 0x1b3   :  { %v2968_v51 = vpop.eup %2967  ;;  %1911 = vperm.xlu1 %2953, %v2966_v61  }
 0x1b4   :  { %1905 = vperm.xlu0 %2952, %v2968_v51  }
 0x1b8   :  { %2954 = vset.pattern.permute.xlu0 %v2976_v30 }
 0x1c0   :  { %v2400_v13 = vpop.f32.mrb[12].mxu0 }
 0x1c1   :  { %v2401_v21 = vpop.f32.mrb[13].mxu0 }
 0x1c2   :  { %v2402_v27 = vadd.f32 %v2401_v21, %v2400_v13  ;;  %v2435_v62 = vpop.f32.mrb[12].mxu1 }
 0x1c3   :  { %v2436_v38 = vpop.f32.mrb[13].mxu1 }
 0x1c4   :  { %v1760_v14 = vadd.f32 %v2402_v27, %v1690_v60  ;;  %v2437_v45 = vadd.f32 %v2436_v38, %v2435_v62 }
 0x1c6   :  { %v1830_v46 = vadd.f32 %v2437_v45, %v1760_v14 }
 0x1da   :  { %v1899_v29 = vpop.f32.mrb[14].mxu0 }
 0x1db   :  { %v1900_v41 = vadd.f32 %v1899_v29, %v1830_v46  ;;  %v2480_v24 = vpop.f32.mrb[15].mxu0 }
 0x232   :  { %v1912_v43 = vpop.permute.xlu1 %1911 }
 0x233   :  { %v1914_v25 = vmul.f32 %v1912_v43, %v1900_v41  ;;  %v1906_v5 = vpop.permute.xlu0 %1905 }
 0x234   :  { %v1908_v9 = vmul.f32 %v1906_v5, %v1198_v40 }
 0x236   :  { %v1915_v44 = vadd.f32 %v1914_v25, %v1908_v9 }
 0x238   :  { %v1923_v35 = vadd.f32 %v1947_v32, %v1915_v44 }
 0x23a   :  { %v1925_v30 = vsel %vm1924_vm8, %v1923_v35, -inf }
 0x23b   :  { %1926 = vmax.xlane.f32.xlu1 %v1925_v30 }
 0x2c8   :  { %v1927_v47 = vpop.xlane.xlu1 %1926 }
 0x2c9   :  { %v1928_v42 = vsub.f32 %v1923_v35, %v1927_v47 }
 0x2cb   :  { %v1929_v57 = vmul.f32 1.442695, %v1928_v42 }
 0x2cd   :  { %2969 = vpow2.f32 %v1929_v57 }
 0x2d7   :  { %v2970_v6 = vpop.eup %2969 }
 0x2d8   :  { %v1931_v2 = vsel %vm1924_vm8, %v2970_v6, 0.0 }
 0x2d9   :  { %1932 = vadd.xlane.f32.xlu0 %v1931_v2 }
 0x366   :  { %v1933_v17 = vpop.xlane.xlu0 %1932 }
 0x367   :  { %2971 = vrcp.f32 %v1933_v17 }
 0x371   :  { %v2972_v33 = vpop.eup %2971 }
 0x372   :  { %v1935_v63 = vmul.f32 %v2972_v33, %v2970_v6 }
 0x374   :  { %1936 = vst.msk [vmem:[%s4842_s9] sm:$0xff] %vm1924_vm8, %v1935_v63 }

</bundles_post_ra>
